<compile_context>
chip_gen: v6e
topology: v6e:2x2x1
jax: 0.10.0
libtpu: 0.0.40
codegen_flags: <defaults>
</compile_context>

<pallas_src>
import jax
import jax.numpy as jnp
from jax.experimental import pallas as pl
from jax.experimental.pallas import tpu as pltpu


def _h_swish(x):
    # x * ReLU6(x + 3) / 6
    return x * jnp.clip(x + 3.0, 0.0, 6.0) * (1.0 / 6.0)


def _sigmoid(x):
    # exp on the EUP; reciprocal kept exact (approx=True would move the
    # divide fully onto the EUP, but the gate tensors are tiny anyway and
    # exact keeps the f32 result tight against the reference).
    return pl.reciprocal(1.0 + jnp.exp(-x))


def ca_kernel(x_ref, p_ref, eh_ref, ew_ref,
              w1_ref, b1_ref, wh_ref, bh_ref, ww_ref, bw_ref, o_ref):
    # x_ref block: (Bt, C, HWp) lane-dense; constants are full-array blocks.
    _, C, _ = x_ref.shape
    H = eh_ref.shape[0]
    mip = w1_ref.shape[0]
    oup = wh_ref.shape[0]            # == C (asserted in the wrapper)

    pool = p_ref[...]                # (HWp, H+W) f32, resident
    eh = eh_ref[...]                 # (H, HWp)   f32, resident
    ew = ew_ref[...]                 # (W, HWp)   f32, resident

    # ---- coordinate pooling: flat 2-D MXU dots (one per channel) ----------
    pooled = []
    for c in range(C):
        x_c = x_ref[:, c, :].astype(jnp.float32)                   # (Bt, HWp)
        pooled.append(jnp.dot(x_c, pool,
                              preferred_element_type=jnp.float32))  # (Bt, H+W)

    # ---- conv1 (1x1, BN folded) + h_swish: scalar weights from SMEM -------
    z = []
    for m in range(mip):
        s = pooled[0] * w1_ref[m, 0]
        for c in range(1, C):
            s = s + pooled[c] * w1_ref[m, c]
        z.append(_h_swish(s + b1_ref[m]))                           # (Bt, H+W)
    zh = [zm[:, :H] for zm in z]                                    # (Bt, H)
    zw = [zm[:, H:] for zm in z]                                    # (Bt, W)

    # ---- conv_h / conv_w + sigmoid gates, MXU expansion, fused gating -----
    for c in range(oup):
        vh = zh[0] * wh_ref[c, 0]
        vw = zw[0] * ww_ref[c, 0]
        for m in range(1, mip):
            vh = vh + zh[m] * wh_ref[c, m]
            vw = vw + zw[m] * ww_ref[c, m]
        a_h = _sigmoid(vh + bh_ref[c])                              # (Bt, H)
        a_w = _sigmoid(vw + bw_ref[c])                              # (Bt, W)

        # Keep at most two (Bt, HWp) f32 slabs live: g_w, then t, then g_h.
        g_w = jnp.dot(a_w, ew, preferred_element_type=jnp.float32)  # (Bt, HWp)
        t = x_ref[:, c, :].astype(jnp.float32) * g_w
        g_h = jnp.dot(a_h, eh, preferred_element_type=jnp.float32)  # (Bt, HWp)
        o_ref[:, c, :] = (t * g_h).astype(o_ref.dtype)


def _round_up(x, m):
    return (x + m - 1) // m * m


def _vmem_capacity_bytes():
    try:
        return int(pltpu.get_tpu_info().vmem_capacity_bytes)
    except Exception:
        return 64 << 20   # conservative fallback (v7x-sized), safe everywhere


def _pick_batch_tile(n, c, hwp, itemsize, budget_bytes):
    """Largest divisor Bt of n that (a) leaves >= min_steps grid steps for
    pipelining / megacore sharding and (b) fits blocks + f32 working set."""
    sublane = max(8, 32 // itemsize)          # 8 (f32), 16 (bf16), 32 (int8)
    c_pad = _round_up(c, sublane)
    min_steps = 4 if n >= 4 else (2 if n >= 2 else 1)

    def vmem_needed(d):
        blocks = 4 * d * c_pad * hwp * itemsize   # in + out, double-buffered
        work = 6 * d * hwp * 4                    # live f32 (Bt, HWp) slabs
        return blocks + work

    best = 1
    for d in range(1, n + 1):
        if n % d or (n // d) < min_steps:
            continue
        if vmem_needed(d) <= budget_bytes:
            best = max(best, d)
    # TODO(synk): for very large C*H*W a single sample may not fit; tile the
    # HW axis as well in that regime.
    return best


def coordinate_attention(x, w1_eff, b1_eff, wh, bh, ww, bw):
    N, C, H, W = x.shape
    mip = w1_eff.shape[0]
    oup = wh.shape[0]
    assert oup == C, "broadcast in `identity * a_w * a_h` requires oup == inp"
    assert w1_eff.shape == (mip, C) and wh.shape == (oup, mip) and ww.shape == (oup, mip)
    assert b1_eff.shape == (mip,) and bh.shape == (oup,) and bw.shape == (oup,)

    HW = H * W
    HWp = _round_up(HW, 128)       # lane-dense, unmasked output stores
    L = H + W
    itemsize = jnp.dtype(x.dtype).itemsize

    # Lane-dense view of x (pure metadata), zero-padded along HW if needed.
    x3 = x.reshape(N, C, HW)
    if HWp != HW:
        x3 = jnp.pad(x3, ((0, 0), (0, 0), (0, HWp - HW)))

    # Constant pooling / expansion matrices (zero rows/cols in the padding).
    lane = jnp.arange(HWp)
    h_idx = lane // W
    w_idx = lane % W
    valid = lane < HW
    pw = jnp.where(valid[:, None] & (h_idx[:, None] == jnp.arange(H)[None, :]),
                   1.0 / W, 0.0).astype(jnp.float32)                 # (HWp, H)
    ph = jnp.where(valid[:, None] & (w_idx[:, None] == jnp.arange(W)[None, :]),
                   1.0 / H, 0.0).astype(jnp.float32)                 # (HWp, W)
    pool = jnp.concatenate([pw, ph], axis=1)                         # (HWp, H+W)
    eh = jnp.where(valid[None, :] & (jnp.arange(H)[:, None] == h_idx[None, :]),
                   1.0, 0.0).astype(jnp.float32)                     # (H, HWp)
    ew = jnp.where(valid[None, :] & (jnp.arange(W)[:, None] == w_idx[None, :]),
                   1.0, 0.0).astype(jnp.float32)                     # (W, HWp)

    # Generation-aware VMEM budget: ~48 MiB on v7x (64 MiB VMEM), 96 MiB on
    # v5e/v6e (128 MiB VMEM).
    vmem_cap = _vmem_capacity_bytes()
    vmem_limit = min((3 * vmem_cap) // 4, 96 << 20)
    budget = max(vmem_limit - (4 << 20), 8 << 20)    # headroom for constants
    Bt = _pick_batch_tile(N, C, HWp, itemsize, budget)
    grid = (N // Bt,)

    # Advisory cost estimate (memory-bound op).
    flops = (
        2 * N * C * HWp * L          # pooling dots
        + 2 * N * C * HWp * L        # gate-expansion dots
        + 2 * N * L * mip * C        # conv1
        + 2 * N * L * oup * mip      # conv_h / conv_w
        + 8 * N * C * HWp            # activations / gating
    )
    transcendentals = N * oup * L
    bytes_accessed = (
        2 * N * C * HWp * itemsize
        + 4 * (pool.size + eh.size + ew.size)
        + 4 * (w1_eff.size + b1_eff.size + wh.size + bh.size + ww.size + bw.size)
    )

    smem_spec = pl.BlockSpec(memory_space=pltpu.MemorySpace.SMEM)

    out3 = pl.pallas_call(
        ca_kernel,
        out_shape=jax.ShapeDtypeStruct((N, C, HWp), x.dtype),
        grid_spec=pltpu.PrefetchScalarGridSpec(
            num_scalar_prefetch=0,
            grid=grid,
            in_specs=[
                pl.BlockSpec((Bt, C, HWp), lambda n: (n, 0, 0)),   # x
                pl.BlockSpec((HWp, L), lambda n: (0, 0)),          # [pw|ph]
                pl.BlockSpec((H, HWp), lambda n: (0, 0)),          # eh
                pl.BlockSpec((W, HWp), lambda n: (0, 0)),          # ew
                smem_spec,  # w1
                smem_spec,  # b1
                smem_spec,  # wh
                smem_spec,  # bh
                smem_spec,  # ww
                smem_spec,  # bw
            ],
            out_specs=pl.BlockSpec((Bt, C, HWp), lambda n: (n, 0, 0)),
        ),
        compiler_params=pltpu.CompilerParams(
            dimension_semantics=("parallel",),
            vmem_limit_bytes=int(vmem_limit),
        ),
        cost_estimate=pl.CostEstimate(
            flops=int(flops),
            transcendentals=int(transcendentals),
            bytes_accessed=int(bytes_accessed),
        ),
    )(x3, pool, eh, ew,
      w1_eff.astype(jnp.float32), b1_eff.astype(jnp.float32),
      wh.astype(jnp.float32), bh.astype(jnp.float32),
      ww.astype(jnp.float32), bw.astype(jnp.float32))

    return out3[:, :, :HW].reshape(N, C, H, W)


def ca_reference(x, w1_eff, b1_eff, wh, bh, ww, bw):
    """Pure-JAX reference of the same forward (BN pre-folded into conv1)."""
    x = x.astype(jnp.float32)
    H = x.shape[2]
    x_h = jnp.mean(x, axis=3)                                    # (N, C, H)
    x_w = jnp.mean(x, axis=2)                                    # (N, C, W)
    y = jnp.concatenate([x_h, x_w], axis=2)                      # (N, C, H+W)
    y = jnp.einsum("mc,ncl->nml", w1_eff, y) + b1_eff[None, :, None]
    y = y * jnp.clip(y + 3.0, 0.0, 6.0) / 6.0
    yh, yw = y[:, :, :H], y[:, :, H:]
    a_h = jax.nn.sigmoid(jnp.einsum("om,nmh->noh", wh, yh) + bh[None, :, None])
    a_w = jax.nn.sigmoid(jnp.einsum("om,nmw->now", ww, yw) + bw[None, :, None])
    return x * a_h[:, :, :, None] * a_w[:, :, None, :]


if __name__ == "__main__":
    # Small shapes consistent with the module: inp = oup = C, reduction = 32
    N, C, H, W = 2, 4, 16, 16
    inp = oup = C
    reduction = 32
    mip = max(8, inp // reduction)             # -> 8
    eps = 1e-5

    key = jax.random.PRNGKey(0)
    ks = jax.random.split(key, 11)

    x = jax.random.normal(ks[0], (N, C, H, W), dtype=jnp.float32)

    # conv1: (mip, inp) 1x1 conv weight + bias
    w1 = jax.random.normal(ks[1], (mip, inp), dtype=jnp.float32) * 0.2
    b1 = jax.random.normal(ks[2], (mip,), dtype=jnp.float32) * 0.1
    # BatchNorm2d(mip) parameters (eval mode)
    gamma = 1.0 + 0.1 * jax.random.normal(ks[3], (mip,), dtype=jnp.float32)
    beta = 0.1 * jax.random.normal(ks[4], (mip,), dtype=jnp.float32)
    running_mean = 0.05 * jax.random.normal(ks[5], (mip,), dtype=jnp.float32)
    running_var = 1.0 + 0.1 * jnp.abs(jax.random.normal(ks[6], (mip,), dtype=jnp.float32))

    # Fold BN (eval) into conv1: scale * (Wx + b - mean) + beta
    scale = gamma / jnp.sqrt(running_var + eps)
    w1_eff = w1 * scale[:, None]                       # (mip, inp)
    b1_eff = scale * (b1 - running_mean) + beta        # (mip,)

    # conv_h / conv_w: (oup, mip) 1x1 conv weights + 1-D biases
    wh = jax.random.normal(ks[7], (oup, mip), dtype=jnp.float32) * 0.2
    bh = 0.1 * jax.random.normal(ks[8], (oup,), dtype=jnp.float32)
    ww = jax.random.normal(ks[9], (oup, mip), dtype=jnp.float32) * 0.2
    bw = 0.1 * jax.random.normal(ks[10], (oup,), dtype=jnp.float32)

    out = coordinate_attention(x, w1_eff, b1_eff, wh, bh, ww, bw)
    out = jax.block_until_ready(out)

    ref = ca_reference(x, w1_eff, b1_eff, wh, bh, ww, bw)
    assert out.shape == (N, C, H, W)
    max_diff = float(jnp.max(jnp.abs(out - ref)))
    assert jnp.allclose(out, ref, rtol=1e-3, atol=1e-3), f"max abs diff {max_diff}"

    print("KERNEL_OK")
</pallas_src>

<mosaic_0001>
module attributes {stable_mosaic.version = 11 : i64} {
  func.func @ca_kernel(%arg0: i32, %arg1: memref<1x4x256xf32, #tpu.memory_space<vmem>>, %arg2: memref<256x32xf32, #tpu.memory_space<vmem>>, %arg3: memref<16x256xf32, #tpu.memory_space<vmem>>, %arg4: memref<16x256xf32, #tpu.memory_space<vmem>>, %arg5: memref<8x4xf32, #tpu.memory_space<smem>>, %arg6: memref<8xf32, #tpu.memory_space<smem>>, %arg7: memref<4x8xf32, #tpu.memory_space<smem>>, %arg8: memref<4xf32, #tpu.memory_space<smem>>, %arg9: memref<4x8xf32, #tpu.memory_space<smem>>, %arg10: memref<4xf32, #tpu.memory_space<smem>>, %arg11: memref<1x4x256xf32, #tpu.memory_space<vmem>>) attributes {dimension_semantics = [#tpu.dimension_semantics<parallel>], iteration_bounds = array<i64: 2>, scalar_prefetch = 0 : i64, scratch_operands = 0 : i64, tpu.core_type = #tpu.core_type<tc>, window_params = [{transform_indices = @transform_0, window_bounds = array<i64: 1, 4, 256>}, {pipeline_mode = #tpu.pipeline_mode<synchronous>, transform_indices = @transform_1, window_bounds = array<i64: 256, 32>}, {pipeline_mode = #tpu.pipeline_mode<synchronous>, transform_indices = @transform_2, window_bounds = array<i64: 16, 256>}, {pipeline_mode = #tpu.pipeline_mode<synchronous>, transform_indices = @transform_3, window_bounds = array<i64: 16, 256>}, {transform_indices = @transform_4, window_bounds = array<i64: 8, 4>}, {transform_indices = @transform_5, window_bounds = array<i64: 8>}, {transform_indices = @transform_6, window_bounds = array<i64: 4, 8>}, {transform_indices = @transform_7, window_bounds = array<i64: 4>}, {transform_indices = @transform_8, window_bounds = array<i64: 4, 8>}, {transform_indices = @transform_9, window_bounds = array<i64: 4>}, {transform_indices = @transform_10, window_bounds = array<i64: 1, 4, 256>}]} {
    %c0 = arith.constant 0 : index
    %c0_0 = arith.constant 0 : index
    %0 = vector.load %arg2[%c0, %c0_0] : memref<256x32xf32, #tpu.memory_space<vmem>>, vector<256x32xf32>
    %c0_1 = arith.constant 0 : index
    %c0_2 = arith.constant 0 : index
    %1 = vector.load %arg3[%c0_1, %c0_2] : memref<16x256xf32, #tpu.memory_space<vmem>>, vector<16x256xf32>
    %c0_3 = arith.constant 0 : index
    %c0_4 = arith.constant 0 : index
    %2 = vector.load %arg4[%c0_3, %c0_4] : memref<16x256xf32, #tpu.memory_space<vmem>>, vector<16x256xf32>
    %c0_5 = arith.constant 0 : index
    %c0_6 = arith.constant 0 : index
    %c0_7 = arith.constant 0 : index
    %3 = vector.load %arg1[%c0_5, %c0_6, %c0_7] : memref<1x4x256xf32, #tpu.memory_space<vmem>>, vector<1x1x256xf32>
    %4 = vector.shape_cast %3 : vector<1x1x256xf32> to vector<1x256xf32>
    %cst = arith.constant dense<0.000000e+00> : vector<1x32xf32>
    %5 = tpu.matmul %4, %0, %cst {dimension_numbers = #tpu.dot_dimension_numbers<[1], [0], [0], [1], [0, 0, 1, 1], [], []>} : vector<1x256xf32>, vector<256x32xf32>, vector<1x32xf32> -> vector<1x32xf32>
    %c0_8 = arith.constant 0 : index
    %c1 = arith.constant 1 : index
    %c0_9 = arith.constant 0 : index
    %6 = vector.load %arg1[%c0_8, %c1, %c0_9] : memref<1x4x256xf32, #tpu.memory_space<vmem>>, vector<1x1x256xf32>
    %7 = vector.shape_cast %6 : vector<1x1x256xf32> to vector<1x256xf32>
    %cst_10 = arith.constant dense<0.000000e+00> : vector<1x32xf32>
    %8 = tpu.matmul %7, %0, %cst_10 {dimension_numbers = #tpu.dot_dimension_numbers<[1], [0], [0], [1], [0, 0, 1, 1], [], []>} : vector<1x256xf32>, vector<256x32xf32>, vector<1x32xf32> -> vector<1x32xf32>
    %c0_11 = arith.constant 0 : index
    %c2 = arith.constant 2 : index
    %c0_12 = arith.constant 0 : index
    %9 = vector.load %arg1[%c0_11, %c2, %c0_12] : memref<1x4x256xf32, #tpu.memory_space<vmem>>, vector<1x1x256xf32>
    %10 = vector.shape_cast %9 : vector<1x1x256xf32> to vector<1x256xf32>
    %cst_13 = arith.constant dense<0.000000e+00> : vector<1x32xf32>
    %11 = tpu.matmul %10, %0, %cst_13 {dimension_numbers = #tpu.dot_dimension_numbers<[1], [0], [0], [1], [0, 0, 1, 1], [], []>} : vector<1x256xf32>, vector<256x32xf32>, vector<1x32xf32> -> vector<1x32xf32>
    %c0_14 = arith.constant 0 : index
    %c3 = arith.constant 3 : index
    %c0_15 = arith.constant 0 : index
    %12 = vector.load %arg1[%c0_14, %c3, %c0_15] : memref<1x4x256xf32, #tpu.memory_space<vmem>>, vector<1x1x256xf32>
    %13 = vector.shape_cast %12 : vector<1x1x256xf32> to vector<1x256xf32>
    %cst_16 = arith.constant dense<0.000000e+00> : vector<1x32xf32>
    %14 = tpu.matmul %13, %0, %cst_16 {dimension_numbers = #tpu.dot_dimension_numbers<[1], [0], [0], [1], [0, 0, 1, 1], [], []>} : vector<1x256xf32>, vector<256x32xf32>, vector<1x32xf32> -> vector<1x32xf32>
    %c0_17 = arith.constant 0 : index
    %c0_18 = arith.constant 0 : index
    %15 = memref.load %arg5[%c0_17, %c0_18] : memref<8x4xf32, #tpu.memory_space<smem>>
    %16 = vector.broadcast %15 : f32 to vector<1x32xf32>
    %17 = arith.mulf %5, %16 : vector<1x32xf32>
    %c0_19 = arith.constant 0 : index
    %c1_20 = arith.constant 1 : index
    %18 = memref.load %arg5[%c0_19, %c1_20] : memref<8x4xf32, #tpu.memory_space<smem>>
    %19 = vector.broadcast %18 : f32 to vector<1x32xf32>
    %20 = arith.mulf %8, %19 : vector<1x32xf32>
    %21 = arith.addf %17, %20 : vector<1x32xf32>
    %c0_21 = arith.constant 0 : index
    %c2_22 = arith.constant 2 : index
    %22 = memref.load %arg5[%c0_21, %c2_22] : memref<8x4xf32, #tpu.memory_space<smem>>
    %23 = vector.broadcast %22 : f32 to vector<1x32xf32>
    %24 = arith.mulf %11, %23 : vector<1x32xf32>
    %25 = arith.addf %21, %24 : vector<1x32xf32>
    %c0_23 = arith.constant 0 : index
    %c3_24 = arith.constant 3 : index
    %26 = memref.load %arg5[%c0_23, %c3_24] : memref<8x4xf32, #tpu.memory_space<smem>>
    %27 = vector.broadcast %26 : f32 to vector<1x32xf32>
    %28 = arith.mulf %14, %27 : vector<1x32xf32>
    %29 = arith.addf %25, %28 : vector<1x32xf32>
    %c0_25 = arith.constant 0 : index
    %30 = memref.load %arg6[%c0_25] : memref<8xf32, #tpu.memory_space<smem>>
    %31 = vector.broadcast %30 : f32 to vector<1x32xf32>
    %32 = arith.addf %29, %31 : vector<1x32xf32>
    %cst_26 = arith.constant 3.000000e+00 : f32
    %33 = vector.broadcast %cst_26 : f32 to vector<1x32xf32>
    %34 = arith.addf %32, %33 : vector<1x32xf32>
    %cst_27 = arith.constant 0.000000e+00 : f32
    %cst_28 = arith.constant 6.000000e+00 : f32
    %35 = vector.broadcast %cst_27 : f32 to vector<1x32xf32>
    %36 = arith.maximumf %35, %34 : vector<1x32xf32>
    %37 = vector.broadcast %cst_28 : f32 to vector<1x32xf32>
    %38 = arith.minimumf %37, %36 : vector<1x32xf32>
    %39 = arith.mulf %32, %38 : vector<1x32xf32>
    %cst_29 = arith.constant 0.166666672 : f32
    %40 = vector.broadcast %cst_29 : f32 to vector<1x32xf32>
    %41 = arith.mulf %39, %40 : vector<1x32xf32>
    %c1_30 = arith.constant 1 : index
    %c0_31 = arith.constant 0 : index
    %42 = memref.load %arg5[%c1_30, %c0_31] : memref<8x4xf32, #tpu.memory_space<smem>>
    %43 = vector.broadcast %42 : f32 to vector<1x32xf32>
    %44 = arith.mulf %5, %43 : vector<1x32xf32>
    %c1_32 = arith.constant 1 : index
    %c1_33 = arith.constant 1 : index
    %45 = memref.load %arg5[%c1_32, %c1_33] : memref<8x4xf32, #tpu.memory_space<smem>>
    %46 = vector.broadcast %45 : f32 to vector<1x32xf32>
    %47 = arith.mulf %8, %46 : vector<1x32xf32>
    %48 = arith.addf %44, %47 : vector<1x32xf32>
    %c1_34 = arith.constant 1 : index
    %c2_35 = arith.constant 2 : index
    %49 = memref.load %arg5[%c1_34, %c2_35] : memref<8x4xf32, #tpu.memory_space<smem>>
    %50 = vector.broadcast %49 : f32 to vector<1x32xf32>
    %51 = arith.mulf %11, %50 : vector<1x32xf32>
    %52 = arith.addf %48, %51 : vector<1x32xf32>
    %c1_36 = arith.constant 1 : index
    %c3_37 = arith.constant 3 : index
    %53 = memref.load %arg5[%c1_36, %c3_37] : memref<8x4xf32, #tpu.memory_space<smem>>
    %54 = vector.broadcast %53 : f32 to vector<1x32xf32>
    %55 = arith.mulf %14, %54 : vector<1x32xf32>
    %56 = arith.addf %52, %55 : vector<1x32xf32>
    %c1_38 = arith.constant 1 : index
    %57 = memref.load %arg6[%c1_38] : memref<8xf32, #tpu.memory_space<smem>>
    %58 = vector.broadcast %57 : f32 to vector<1x32xf32>
    %59 = arith.addf %56, %58 : vector<1x32xf32>
    %cst_39 = arith.constant 3.000000e+00 : f32
    %60 = vector.broadcast %cst_39 : f32 to vector<1x32xf32>
    %61 = arith.addf %59, %60 : vector<1x32xf32>
    %cst_40 = arith.constant 0.000000e+00 : f32
    %cst_41 = arith.constant 6.000000e+00 : f32
    %62 = vector.broadcast %cst_40 : f32 to vector<1x32xf32>
    %63 = arith.maximumf %62, %61 : vector<1x32xf32>
    %64 = vector.broadcast %cst_41 : f32 to vector<1x32xf32>
    %65 = arith.minimumf %64, %63 : vector<1x32xf32>
    %66 = arith.mulf %59, %65 : vector<1x32xf32>
    %cst_42 = arith.constant 0.166666672 : f32
    %67 = vector.broadcast %cst_42 : f32 to vector<1x32xf32>
    %68 = arith.mulf %66, %67 : vector<1x32xf32>
    %c2_43 = arith.constant 2 : index
    %c0_44 = arith.constant 0 : index
    %69 = memref.load %arg5[%c2_43, %c0_44] : memref<8x4xf32, #tpu.memory_space<smem>>
    %70 = vector.broadcast %69 : f32 to vector<1x32xf32>
    %71 = arith.mulf %5, %70 : vector<1x32xf32>
    %c2_45 = arith.constant 2 : index
    %c1_46 = arith.constant 1 : index
    %72 = memref.load %arg5[%c2_45, %c1_46] : memref<8x4xf32, #tpu.memory_space<smem>>
    %73 = vector.broadcast %72 : f32 to vector<1x32xf32>
    %74 = arith.mulf %8, %73 : vector<1x32xf32>
    %75 = arith.addf %71, %74 : vector<1x32xf32>
    %c2_47 = arith.constant 2 : index
    %c2_48 = arith.constant 2 : index
    %76 = memref.load %arg5[%c2_47, %c2_48] : memref<8x4xf32, #tpu.memory_space<smem>>
    %77 = vector.broadcast %76 : f32 to vector<1x32xf32>
    %78 = arith.mulf %11, %77 : vector<1x32xf32>
    %79 = arith.addf %75, %78 : vector<1x32xf32>
    %c2_49 = arith.constant 2 : index
    %c3_50 = arith.constant 3 : index
    %80 = memref.load %arg5[%c2_49, %c3_50] : memref<8x4xf32, #tpu.memory_space<smem>>
    %81 = vector.broadcast %80 : f32 to vector<1x32xf32>
    %82 = arith.mulf %14, %81 : vector<1x32xf32>
    %83 = arith.addf %79, %82 : vector<1x32xf32>
    %c2_51 = arith.constant 2 : index
    %84 = memref.load %arg6[%c2_51] : memref<8xf32, #tpu.memory_space<smem>>
    %85 = vector.broadcast %84 : f32 to vector<1x32xf32>
    %86 = arith.addf %83, %85 : vector<1x32xf32>
    %cst_52 = arith.constant 3.000000e+00 : f32
    %87 = vector.broadcast %cst_52 : f32 to vector<1x32xf32>
    %88 = arith.addf %86, %87 : vector<1x32xf32>
    %cst_53 = arith.constant 0.000000e+00 : f32
    %cst_54 = arith.constant 6.000000e+00 : f32
    %89 = vector.broadcast %cst_53 : f32 to vector<1x32xf32>
    %90 = arith.maximumf %89, %88 : vector<1x32xf32>
    %91 = vector.broadcast %cst_54 : f32 to vector<1x32xf32>
    %92 = arith.minimumf %91, %90 : vector<1x32xf32>
    %93 = arith.mulf %86, %92 : vector<1x32xf32>
    %cst_55 = arith.constant 0.166666672 : f32
    %94 = vector.broadcast %cst_55 : f32 to vector<1x32xf32>
    %95 = arith.mulf %93, %94 : vector<1x32xf32>
    %c3_56 = arith.constant 3 : index
    %c0_57 = arith.constant 0 : index
    %96 = memref.load %arg5[%c3_56, %c0_57] : memref<8x4xf32, #tpu.memory_space<smem>>
    %97 = vector.broadcast %96 : f32 to vector<1x32xf32>
    %98 = arith.mulf %5, %97 : vector<1x32xf32>
    %c3_58 = arith.constant 3 : index
    %c1_59 = arith.constant 1 : index
    %99 = memref.load %arg5[%c3_58, %c1_59] : memref<8x4xf32, #tpu.memory_space<smem>>
    %100 = vector.broadcast %99 : f32 to vector<1x32xf32>
    %101 = arith.mulf %8, %100 : vector<1x32xf32>
    %102 = arith.addf %98, %101 : vector<1x32xf32>
    %c3_60 = arith.constant 3 : index
    %c2_61 = arith.constant 2 : index
    %103 = memref.load %arg5[%c3_60, %c2_61] : memref<8x4xf32, #tpu.memory_space<smem>>
    %104 = vector.broadcast %103 : f32 to vector<1x32xf32>
    %105 = arith.mulf %11, %104 : vector<1x32xf32>
    %106 = arith.addf %102, %105 : vector<1x32xf32>
    %c3_62 = arith.constant 3 : index
    %c3_63 = arith.constant 3 : index
    %107 = memref.load %arg5[%c3_62, %c3_63] : memref<8x4xf32, #tpu.memory_space<smem>>
    %108 = vector.broadcast %107 : f32 to vector<1x32xf32>
    %109 = arith.mulf %14, %108 : vector<1x32xf32>
    %110 = arith.addf %106, %109 : vector<1x32xf32>
    %c3_64 = arith.constant 3 : index
    %111 = memref.load %arg6[%c3_64] : memref<8xf32, #tpu.memory_space<smem>>
    %112 = vector.broadcast %111 : f32 to vector<1x32xf32>
    %113 = arith.addf %110, %112 : vector<1x32xf32>
    %cst_65 = arith.constant 3.000000e+00 : f32
    %114 = vector.broadcast %cst_65 : f32 to vector<1x32xf32>
    %115 = arith.addf %113, %114 : vector<1x32xf32>
    %cst_66 = arith.constant 0.000000e+00 : f32
    %cst_67 = arith.constant 6.000000e+00 : f32
    %116 = vector.broadcast %cst_66 : f32 to vector<1x32xf32>
    %117 = arith.maximumf %116, %115 : vector<1x32xf32>
    %118 = vector.broadcast %cst_67 : f32 to vector<1x32xf32>
    %119 = arith.minimumf %118, %117 : vector<1x32xf32>
    %120 = arith.mulf %113, %119 : vector<1x32xf32>
    %cst_68 = arith.constant 0.166666672 : f32
    %121 = vector.broadcast %cst_68 : f32 to vector<1x32xf32>
    %122 = arith.mulf %120, %121 : vector<1x32xf32>
    %c4 = arith.constant 4 : index
    %c0_69 = arith.constant 0 : index
    %123 = memref.load %arg5[%c4, %c0_69] : memref<8x4xf32, #tpu.memory_space<smem>>
    %124 = vector.broadcast %123 : f32 to vector<1x32xf32>
    %125 = arith.mulf %5, %124 : vector<1x32xf32>
    %c4_70 = arith.constant 4 : index
    %c1_71 = arith.constant 1 : index
    %126 = memref.load %arg5[%c4_70, %c1_71] : memref<8x4xf32, #tpu.memory_space<smem>>
    %127 = vector.broadcast %126 : f32 to vector<1x32xf32>
    %128 = arith.mulf %8, %127 : vector<1x32xf32>
    %129 = arith.addf %125, %128 : vector<1x32xf32>
    %c4_72 = arith.constant 4 : index
    %c2_73 = arith.constant 2 : index
    %130 = memref.load %arg5[%c4_72, %c2_73] : memref<8x4xf32, #tpu.memory_space<smem>>
    %131 = vector.broadcast %130 : f32 to vector<1x32xf32>
    %132 = arith.mulf %11, %131 : vector<1x32xf32>
    %133 = arith.addf %129, %132 : vector<1x32xf32>
    %c4_74 = arith.constant 4 : index
    %c3_75 = arith.constant 3 : index
    %134 = memref.load %arg5[%c4_74, %c3_75] : memref<8x4xf32, #tpu.memory_space<smem>>
    %135 = vector.broadcast %134 : f32 to vector<1x32xf32>
    %136 = arith.mulf %14, %135 : vector<1x32xf32>
    %137 = arith.addf %133, %136 : vector<1x32xf32>
    %c4_76 = arith.constant 4 : index
    %138 = memref.load %arg6[%c4_76] : memref<8xf32, #tpu.memory_space<smem>>
    %139 = vector.broadcast %138 : f32 to vector<1x32xf32>
    %140 = arith.addf %137, %139 : vector<1x32xf32>
    %cst_77 = arith.constant 3.000000e+00 : f32
    %141 = vector.broadcast %cst_77 : f32 to vector<1x32xf32>
    %142 = arith.addf %140, %141 : vector<1x32xf32>
    %cst_78 = arith.constant 0.000000e+00 : f32
    %cst_79 = arith.constant 6.000000e+00 : f32
    %143 = vector.broadcast %cst_78 : f32 to vector<1x32xf32>
    %144 = arith.maximumf %143, %142 : vector<1x32xf32>
    %145 = vector.broadcast %cst_79 : f32 to vector<1x32xf32>
    %146 = arith.minimumf %145, %144 : vector<1x32xf32>
    %147 = arith.mulf %140, %146 : vector<1x32xf32>
    %cst_80 = arith.constant 0.166666672 : f32
    %148 = vector.broadcast %cst_80 : f32 to vector<1x32xf32>
    %149 = arith.mulf %147, %148 : vector<1x32xf32>
    %c5 = arith.constant 5 : index
    %c0_81 = arith.constant 0 : index
    %150 = memref.load %arg5[%c5, %c0_81] : memref<8x4xf32, #tpu.memory_space<smem>>
    %151 = vector.broadcast %150 : f32 to vector<1x32xf32>
    %152 = arith.mulf %5, %151 : vector<1x32xf32>
    %c5_82 = arith.constant 5 : index
    %c1_83 = arith.constant 1 : index
    %153 = memref.load %arg5[%c5_82, %c1_83] : memref<8x4xf32, #tpu.memory_space<smem>>
    %154 = vector.broadcast %153 : f32 to vector<1x32xf32>
    %155 = arith.mulf %8, %154 : vector<1x32xf32>
    %156 = arith.addf %152, %155 : vector<1x32xf32>
    %c5_84 = arith.constant 5 : index
    %c2_85 = arith.constant 2 : index
    %157 = memref.load %arg5[%c5_84, %c2_85] : memref<8x4xf32, #tpu.memory_space<smem>>
    %158 = vector.broadcast %157 : f32 to vector<1x32xf32>
    %159 = arith.mulf %11, %158 : vector<1x32xf32>
    %160 = arith.addf %156, %159 : vector<1x32xf32>
    %c5_86 = arith.constant 5 : index
    %c3_87 = arith.constant 3 : index
    %161 = memref.load %arg5[%c5_86, %c3_87] : memref<8x4xf32, #tpu.memory_space<smem>>
    %162 = vector.broadcast %161 : f32 to vector<1x32xf32>
    %163 = arith.mulf %14, %162 : vector<1x32xf32>
    %164 = arith.addf %160, %163 : vector<1x32xf32>
    %c5_88 = arith.constant 5 : index
    %165 = memref.load %arg6[%c5_88] : memref<8xf32, #tpu.memory_space<smem>>
    %166 = vector.broadcast %165 : f32 to vector<1x32xf32>
    %167 = arith.addf %164, %166 : vector<1x32xf32>
    %cst_89 = arith.constant 3.000000e+00 : f32
    %168 = vector.broadcast %cst_89 : f32 to vector<1x32xf32>
    %169 = arith.addf %167, %168 : vector<1x32xf32>
    %cst_90 = arith.constant 0.000000e+00 : f32
    %cst_91 = arith.constant 6.000000e+00 : f32
    %170 = vector.broadcast %cst_90 : f32 to vector<1x32xf32>
    %171 = arith.maximumf %170, %169 : vector<1x32xf32>
    %172 = vector.broadcast %cst_91 : f32 to vector<1x32xf32>
    %173 = arith.minimumf %172, %171 : vector<1x32xf32>
    %174 = arith.mulf %167, %173 : vector<1x32xf32>
    %cst_92 = arith.constant 0.166666672 : f32
    %175 = vector.broadcast %cst_92 : f32 to vector<1x32xf32>
    %176 = arith.mulf %174, %175 : vector<1x32xf32>
    %c6 = arith.constant 6 : index
    %c0_93 = arith.constant 0 : index
    %177 = memref.load %arg5[%c6, %c0_93] : memref<8x4xf32, #tpu.memory_space<smem>>
    %178 = vector.broadcast %177 : f32 to vector<1x32xf32>
    %179 = arith.mulf %5, %178 : vector<1x32xf32>
    %c6_94 = arith.constant 6 : index
    %c1_95 = arith.constant 1 : index
    %180 = memref.load %arg5[%c6_94, %c1_95] : memref<8x4xf32, #tpu.memory_space<smem>>
    %181 = vector.broadcast %180 : f32 to vector<1x32xf32>
    %182 = arith.mulf %8, %181 : vector<1x32xf32>
    %183 = arith.addf %179, %182 : vector<1x32xf32>
    %c6_96 = arith.constant 6 : index
    %c2_97 = arith.constant 2 : index
    %184 = memref.load %arg5[%c6_96, %c2_97] : memref<8x4xf32, #tpu.memory_space<smem>>
    %185 = vector.broadcast %184 : f32 to vector<1x32xf32>
    %186 = arith.mulf %11, %185 : vector<1x32xf32>
    %187 = arith.addf %183, %186 : vector<1x32xf32>
    %c6_98 = arith.constant 6 : index
    %c3_99 = arith.constant 3 : index
    %188 = memref.load %arg5[%c6_98, %c3_99] : memref<8x4xf32, #tpu.memory_space<smem>>
    %189 = vector.broadcast %188 : f32 to vector<1x32xf32>
    %190 = arith.mulf %14, %189 : vector<1x32xf32>
    %191 = arith.addf %187, %190 : vector<1x32xf32>
    %c6_100 = arith.constant 6 : index
    %192 = memref.load %arg6[%c6_100] : memref<8xf32, #tpu.memory_space<smem>>
    %193 = vector.broadcast %192 : f32 to vector<1x32xf32>
    %194 = arith.addf %191, %193 : vector<1x32xf32>
    %cst_101 = arith.constant 3.000000e+00 : f32
    %195 = vector.broadcast %cst_101 : f32 to vector<1x32xf32>
    %196 = arith.addf %194, %195 : vector<1x32xf32>
    %cst_102 = arith.constant 0.000000e+00 : f32
    %cst_103 = arith.constant 6.000000e+00 : f32
    %197 = vector.broadcast %cst_102 : f32 to vector<1x32xf32>
    %198 = arith.maximumf %197, %196 : vector<1x32xf32>
    %199 = vector.broadcast %cst_103 : f32 to vector<1x32xf32>
    %200 = arith.minimumf %199, %198 : vector<1x32xf32>
    %201 = arith.mulf %194, %200 : vector<1x32xf32>
    %cst_104 = arith.constant 0.166666672 : f32
    %202 = vector.broadcast %cst_104 : f32 to vector<1x32xf32>
    %203 = arith.mulf %201, %202 : vector<1x32xf32>
    %c7 = arith.constant 7 : index
    %c0_105 = arith.constant 0 : index
    %204 = memref.load %arg5[%c7, %c0_105] : memref<8x4xf32, #tpu.memory_space<smem>>
    %205 = vector.broadcast %204 : f32 to vector<1x32xf32>
    %206 = arith.mulf %5, %205 : vector<1x32xf32>
    %c7_106 = arith.constant 7 : index
    %c1_107 = arith.constant 1 : index
    %207 = memref.load %arg5[%c7_106, %c1_107] : memref<8x4xf32, #tpu.memory_space<smem>>
    %208 = vector.broadcast %207 : f32 to vector<1x32xf32>
    %209 = arith.mulf %8, %208 : vector<1x32xf32>
    %210 = arith.addf %206, %209 : vector<1x32xf32>
    %c7_108 = arith.constant 7 : index
    %c2_109 = arith.constant 2 : index
    %211 = memref.load %arg5[%c7_108, %c2_109] : memref<8x4xf32, #tpu.memory_space<smem>>
    %212 = vector.broadcast %211 : f32 to vector<1x32xf32>
    %213 = arith.mulf %11, %212 : vector<1x32xf32>
    %214 = arith.addf %210, %213 : vector<1x32xf32>
    %c7_110 = arith.constant 7 : index
    %c3_111 = arith.constant 3 : index
    %215 = memref.load %arg5[%c7_110, %c3_111] : memref<8x4xf32, #tpu.memory_space<smem>>
    %216 = vector.broadcast %215 : f32 to vector<1x32xf32>
    %217 = arith.mulf %14, %216 : vector<1x32xf32>
    %218 = arith.addf %214, %217 : vector<1x32xf32>
    %c7_112 = arith.constant 7 : index
    %219 = memref.load %arg6[%c7_112] : memref<8xf32, #tpu.memory_space<smem>>
    %220 = vector.broadcast %219 : f32 to vector<1x32xf32>
    %221 = arith.addf %218, %220 : vector<1x32xf32>
    %cst_113 = arith.constant 3.000000e+00 : f32
    %222 = vector.broadcast %cst_113 : f32 to vector<1x32xf32>
    %223 = arith.addf %221, %222 : vector<1x32xf32>
    %cst_114 = arith.constant 0.000000e+00 : f32
    %cst_115 = arith.constant 6.000000e+00 : f32
    %224 = vector.broadcast %cst_114 : f32 to vector<1x32xf32>
    %225 = arith.maximumf %224, %223 : vector<1x32xf32>
    %226 = vector.broadcast %cst_115 : f32 to vector<1x32xf32>
    %227 = arith.minimumf %226, %225 : vector<1x32xf32>
    %228 = arith.mulf %221, %227 : vector<1x32xf32>
    %cst_116 = arith.constant 0.166666672 : f32
    %229 = vector.broadcast %cst_116 : f32 to vector<1x32xf32>
    %230 = arith.mulf %228, %229 : vector<1x32xf32>
    %231 = vector.extract_strided_slice %41 {offsets = [0, 0], sizes = [1, 16], strides = [1, 1]} : vector<1x32xf32> to vector<1x16xf32>
    %232 = vector.extract_strided_slice %68 {offsets = [0, 0], sizes = [1, 16], strides = [1, 1]} : vector<1x32xf32> to vector<1x16xf32>
    %233 = vector.extract_strided_slice %95 {offsets = [0, 0], sizes = [1, 16], strides = [1, 1]} : vector<1x32xf32> to vector<1x16xf32>
    %234 = vector.extract_strided_slice %122 {offsets = [0, 0], sizes = [1, 16], strides = [1, 1]} : vector<1x32xf32> to vector<1x16xf32>
    %235 = vector.extract_strided_slice %149 {offsets = [0, 0], sizes = [1, 16], strides = [1, 1]} : vector<1x32xf32> to vector<1x16xf32>
    %236 = vector.extract_strided_slice %176 {offsets = [0, 0], sizes = [1, 16], strides = [1, 1]} : vector<1x32xf32> to vector<1x16xf32>
    %237 = vector.extract_strided_slice %203 {offsets = [0, 0], sizes = [1, 16], strides = [1, 1]} : vector<1x32xf32> to vector<1x16xf32>
    %238 = vector.extract_strided_slice %230 {offsets = [0, 0], sizes = [1, 16], strides = [1, 1]} : vector<1x32xf32> to vector<1x16xf32>
    %239 = vector.extract_strided_slice %41 {offsets = [0, 16], sizes = [1, 16], strides = [1, 1]} : vector<1x32xf32> to vector<1x16xf32>
    %240 = vector.extract_strided_slice %68 {offsets = [0, 16], sizes = [1, 16], strides = [1, 1]} : vector<1x32xf32> to vector<1x16xf32>
    %241 = vector.extract_strided_slice %95 {offsets = [0, 16], sizes = [1, 16], strides = [1, 1]} : vector<1x32xf32> to vector<1x16xf32>
    %242 = vector.extract_strided_slice %122 {offsets = [0, 16], sizes = [1, 16], strides = [1, 1]} : vector<1x32xf32> to vector<1x16xf32>
    %243 = vector.extract_strided_slice %149 {offsets = [0, 16], sizes = [1, 16], strides = [1, 1]} : vector<1x32xf32> to vector<1x16xf32>
    %244 = vector.extract_strided_slice %176 {offsets = [0, 16], sizes = [1, 16], strides = [1, 1]} : vector<1x32xf32> to vector<1x16xf32>
    %245 = vector.extract_strided_slice %203 {offsets = [0, 16], sizes = [1, 16], strides = [1, 1]} : vector<1x32xf32> to vector<1x16xf32>
    %246 = vector.extract_strided_slice %230 {offsets = [0, 16], sizes = [1, 16], strides = [1, 1]} : vector<1x32xf32> to vector<1x16xf32>
    %c0_117 = arith.constant 0 : index
    %c0_118 = arith.constant 0 : index
    %247 = memref.load %arg7[%c0_117, %c0_118] : memref<4x8xf32, #tpu.memory_space<smem>>
    %248 = vector.broadcast %247 : f32 to vector<1x16xf32>
    %249 = arith.mulf %231, %248 : vector<1x16xf32>
    %c0_119 = arith.constant 0 : index
    %c0_120 = arith.constant 0 : index
    %250 = memref.load %arg9[%c0_119, %c0_120] : memref<4x8xf32, #tpu.memory_space<smem>>
    %251 = vector.broadcast %250 : f32 to vector<1x16xf32>
    %252 = arith.mulf %239, %251 : vector<1x16xf32>
    %c0_121 = arith.constant 0 : index
    %c1_122 = arith.constant 1 : index
    %253 = memref.load %arg7[%c0_121, %c1_122] : memref<4x8xf32, #tpu.memory_space<smem>>
    %254 = vector.broadcast %253 : f32 to vector<1x16xf32>
    %255 = arith.mulf %232, %254 : vector<1x16xf32>
    %256 = arith.addf %249, %255 : vector<1x16xf32>
    %c0_123 = arith.constant 0 : index
    %c1_124 = arith.constant 1 : index
    %257 = memref.load %arg9[%c0_123, %c1_124] : memref<4x8xf32, #tpu.memory_space<smem>>
    %258 = vector.broadcast %257 : f32 to vector<1x16xf32>
    %259 = arith.mulf %240, %258 : vector<1x16xf32>
    %260 = arith.addf %252, %259 : vector<1x16xf32>
    %c0_125 = arith.constant 0 : index
    %c2_126 = arith.constant 2 : index
    %261 = memref.load %arg7[%c0_125, %c2_126] : memref<4x8xf32, #tpu.memory_space<smem>>
    %262 = vector.broadcast %261 : f32 to vector<1x16xf32>
    %263 = arith.mulf %233, %262 : vector<1x16xf32>
    %264 = arith.addf %256, %263 : vector<1x16xf32>
    %c0_127 = arith.constant 0 : index
    %c2_128 = arith.constant 2 : index
    %265 = memref.load %arg9[%c0_127, %c2_128] : memref<4x8xf32, #tpu.memory_space<smem>>
    %266 = vector.broadcast %265 : f32 to vector<1x16xf32>
    %267 = arith.mulf %241, %266 : vector<1x16xf32>
    %268 = arith.addf %260, %267 : vector<1x16xf32>
    %c0_129 = arith.constant 0 : index
    %c3_130 = arith.constant 3 : index
    %269 = memref.load %arg7[%c0_129, %c3_130] : memref<4x8xf32, #tpu.memory_space<smem>>
    %270 = vector.broadcast %269 : f32 to vector<1x16xf32>
    %271 = arith.mulf %234, %270 : vector<1x16xf32>
    %272 = arith.addf %264, %271 : vector<1x16xf32>
    %c0_131 = arith.constant 0 : index
    %c3_132 = arith.constant 3 : index
    %273 = memref.load %arg9[%c0_131, %c3_132] : memref<4x8xf32, #tpu.memory_space<smem>>
    %274 = vector.broadcast %273 : f32 to vector<1x16xf32>
    %275 = arith.mulf %242, %274 : vector<1x16xf32>
    %276 = arith.addf %268, %275 : vector<1x16xf32>
    %c0_133 = arith.constant 0 : index
    %c4_134 = arith.constant 4 : index
    %277 = memref.load %arg7[%c0_133, %c4_134] : memref<4x8xf32, #tpu.memory_space<smem>>
    %278 = vector.broadcast %277 : f32 to vector<1x16xf32>
    %279 = arith.mulf %235, %278 : vector<1x16xf32>
    %280 = arith.addf %272, %279 : vector<1x16xf32>
    %c0_135 = arith.constant 0 : index
    %c4_136 = arith.constant 4 : index
    %281 = memref.load %arg9[%c0_135, %c4_136] : memref<4x8xf32, #tpu.memory_space<smem>>
    %282 = vector.broadcast %281 : f32 to vector<1x16xf32>
    %283 = arith.mulf %243, %282 : vector<1x16xf32>
    %284 = arith.addf %276, %283 : vector<1x16xf32>
    %c0_137 = arith.constant 0 : index
    %c5_138 = arith.constant 5 : index
    %285 = memref.load %arg7[%c0_137, %c5_138] : memref<4x8xf32, #tpu.memory_space<smem>>
    %286 = vector.broadcast %285 : f32 to vector<1x16xf32>
    %287 = arith.mulf %236, %286 : vector<1x16xf32>
    %288 = arith.addf %280, %287 : vector<1x16xf32>
    %c0_139 = arith.constant 0 : index
    %c5_140 = arith.constant 5 : index
    %289 = memref.load %arg9[%c0_139, %c5_140] : memref<4x8xf32, #tpu.memory_space<smem>>
    %290 = vector.broadcast %289 : f32 to vector<1x16xf32>
    %291 = arith.mulf %244, %290 : vector<1x16xf32>
    %292 = arith.addf %284, %291 : vector<1x16xf32>
    %c0_141 = arith.constant 0 : index
    %c6_142 = arith.constant 6 : index
    %293 = memref.load %arg7[%c0_141, %c6_142] : memref<4x8xf32, #tpu.memory_space<smem>>
    %294 = vector.broadcast %293 : f32 to vector<1x16xf32>
    %295 = arith.mulf %237, %294 : vector<1x16xf32>
    %296 = arith.addf %288, %295 : vector<1x16xf32>
    %c0_143 = arith.constant 0 : index
    %c6_144 = arith.constant 6 : index
    %297 = memref.load %arg9[%c0_143, %c6_144] : memref<4x8xf32, #tpu.memory_space<smem>>
    %298 = vector.broadcast %297 : f32 to vector<1x16xf32>
    %299 = arith.mulf %245, %298 : vector<1x16xf32>
    %300 = arith.addf %292, %299 : vector<1x16xf32>
    %c0_145 = arith.constant 0 : index
    %c7_146 = arith.constant 7 : index
    %301 = memref.load %arg7[%c0_145, %c7_146] : memref<4x8xf32, #tpu.memory_space<smem>>
    %302 = vector.broadcast %301 : f32 to vector<1x16xf32>
    %303 = arith.mulf %238, %302 : vector<1x16xf32>
    %304 = arith.addf %296, %303 : vector<1x16xf32>
    %c0_147 = arith.constant 0 : index
    %c7_148 = arith.constant 7 : index
    %305 = memref.load %arg9[%c0_147, %c7_148] : memref<4x8xf32, #tpu.memory_space<smem>>
    %306 = vector.broadcast %305 : f32 to vector<1x16xf32>
    %307 = arith.mulf %246, %306 : vector<1x16xf32>
    %308 = arith.addf %300, %307 : vector<1x16xf32>
    %c0_149 = arith.constant 0 : index
    %309 = memref.load %arg8[%c0_149] : memref<4xf32, #tpu.memory_space<smem>>
    %310 = vector.broadcast %309 : f32 to vector<1x16xf32>
    %311 = arith.addf %304, %310 : vector<1x16xf32>
    %cst_150 = arith.constant 0.000000e+00 : f32
    %312 = vector.broadcast %cst_150 : f32 to vector<1x16xf32>
    %313 = arith.subf %312, %311 : vector<1x16xf32>
    %314 = math.exp %313 : vector<1x16xf32>
    %cst_151 = arith.constant 1.000000e+00 : f32
    %315 = vector.broadcast %cst_151 : f32 to vector<1x16xf32>
    %316 = arith.addf %315, %314 : vector<1x16xf32>
    %317 = tpu.reciprocal %316 : vector<1x16xf32> -> vector<1x16xf32>
    %c0_152 = arith.constant 0 : index
    %318 = memref.load %arg10[%c0_152] : memref<4xf32, #tpu.memory_space<smem>>
    %319 = vector.broadcast %318 : f32 to vector<1x16xf32>
    %320 = arith.addf %308, %319 : vector<1x16xf32>
    %cst_153 = arith.constant 0.000000e+00 : f32
    %321 = vector.broadcast %cst_153 : f32 to vector<1x16xf32>
    %322 = arith.subf %321, %320 : vector<1x16xf32>
    %323 = math.exp %322 : vector<1x16xf32>
    %cst_154 = arith.constant 1.000000e+00 : f32
    %324 = vector.broadcast %cst_154 : f32 to vector<1x16xf32>
    %325 = arith.addf %324, %323 : vector<1x16xf32>
    %326 = tpu.reciprocal %325 : vector<1x16xf32> -> vector<1x16xf32>
    %cst_155 = arith.constant dense<0.000000e+00> : vector<1x256xf32>
    %327 = tpu.matmul %326, %2, %cst_155 {dimension_numbers = #tpu.dot_dimension_numbers<[1], [0], [0], [1], [0, 0, 1, 1], [], []>} : vector<1x16xf32>, vector<16x256xf32>, vector<1x256xf32> -> vector<1x256xf32>
    %c0_156 = arith.constant 0 : index
    %c0_157 = arith.constant 0 : index
    %c0_158 = arith.constant 0 : index
    %328 = vector.load %arg1[%c0_156, %c0_157, %c0_158] : memref<1x4x256xf32, #tpu.memory_space<vmem>>, vector<1x1x256xf32>
    %329 = vector.shape_cast %328 : vector<1x1x256xf32> to vector<1x256xf32>
    %330 = arith.mulf %329, %327 : vector<1x256xf32>
    %cst_159 = arith.constant dense<0.000000e+00> : vector<1x256xf32>
    %331 = tpu.matmul %317, %1, %cst_159 {dimension_numbers = #tpu.dot_dimension_numbers<[1], [0], [0], [1], [0, 0, 1, 1], [], []>} : vector<1x16xf32>, vector<16x256xf32>, vector<1x256xf32> -> vector<1x256xf32>
    %332 = arith.mulf %330, %331 : vector<1x256xf32>
    %c0_160 = arith.constant 0 : index
    %c0_161 = arith.constant 0 : index
    %c0_162 = arith.constant 0 : index
    %333 = vector.load %arg11[%c0_160, %c0_161, %c0_162] : memref<1x4x256xf32, #tpu.memory_space<vmem>>, vector<1x1x256xf32>
    %334 = vector.shape_cast %333 : vector<1x1x256xf32> to vector<1x256xf32>
    %335 = vector.shape_cast %332 : vector<1x256xf32> to vector<1x1x256xf32>
    tpu.vector_store %arg11[%c0_160, %c0_161, %c0_162], %335 {strides = array<i32>} : memref<1x4x256xf32, #tpu.memory_space<vmem>>, vector<1x1x256xf32>,
    %c1_163 = arith.constant 1 : index
    %c0_164 = arith.constant 0 : index
    %336 = memref.load %arg7[%c1_163, %c0_164] : memref<4x8xf32, #tpu.memory_space<smem>>
    %337 = vector.broadcast %336 : f32 to vector<1x16xf32>
    %338 = arith.mulf %231, %337 : vector<1x16xf32>
    %c1_165 = arith.constant 1 : index
    %c0_166 = arith.constant 0 : index
    %339 = memref.load %arg9[%c1_165, %c0_166] : memref<4x8xf32, #tpu.memory_space<smem>>
    %340 = vector.broadcast %339 : f32 to vector<1x16xf32>
    %341 = arith.mulf %239, %340 : vector<1x16xf32>
    %c1_167 = arith.constant 1 : index
    %c1_168 = arith.constant 1 : index
    %342 = memref.load %arg7[%c1_167, %c1_168] : memref<4x8xf32, #tpu.memory_space<smem>>
    %343 = vector.broadcast %342 : f32 to vector<1x16xf32>
    %344 = arith.mulf %232, %343 : vector<1x16xf32>
    %345 = arith.addf %338, %344 : vector<1x16xf32>
    %c1_169 = arith.constant 1 : index
    %c1_170 = arith.constant 1 : index
    %346 = memref.load %arg9[%c1_169, %c1_170] : memref<4x8xf32, #tpu.memory_space<smem>>
    %347 = vector.broadcast %346 : f32 to vector<1x16xf32>
    %348 = arith.mulf %240, %347 : vector<1x16xf32>
    %349 = arith.addf %341, %348 : vector<1x16xf32>
    %c1_171 = arith.constant 1 : index
    %c2_172 = arith.constant 2 : index
    %350 = memref.load %arg7[%c1_171, %c2_172] : memref<4x8xf32, #tpu.memory_space<smem>>
    %351 = vector.broadcast %350 : f32 to vector<1x16xf32>
    %352 = arith.mulf %233, %351 : vector<1x16xf32>
    %353 = arith.addf %345, %352 : vector<1x16xf32>
    %c1_173 = arith.constant 1 : index
    %c2_174 = arith.constant 2 : index
    %354 = memref.load %arg9[%c1_173, %c2_174] : memref<4x8xf32, #tpu.memory_space<smem>>
    %355 = vector.broadcast %354 : f32 to vector<1x16xf32>
    %356 = arith.mulf %241, %355 : vector<1x16xf32>
    %357 = arith.addf %349, %356 : vector<1x16xf32>
    %c1_175 = arith.constant 1 : index
    %c3_176 = arith.constant 3 : index
    %358 = memref.load %arg7[%c1_175, %c3_176] : memref<4x8xf32, #tpu.memory_space<smem>>
    %359 = vector.broadcast %358 : f32 to vector<1x16xf32>
    %360 = arith.mulf %234, %359 : vector<1x16xf32>
    %361 = arith.addf %353, %360 : vector<1x16xf32>
    %c1_177 = arith.constant 1 : index
    %c3_178 = arith.constant 3 : index
    %362 = memref.load %arg9[%c1_177, %c3_178] : memref<4x8xf32, #tpu.memory_space<smem>>
    %363 = vector.broadcast %362 : f32 to vector<1x16xf32>
    %364 = arith.mulf %242, %363 : vector<1x16xf32>
    %365 = arith.addf %357, %364 : vector<1x16xf32>
    %c1_179 = arith.constant 1 : index
    %c4_180 = arith.constant 4 : index
    %366 = memref.load %arg7[%c1_179, %c4_180] : memref<4x8xf32, #tpu.memory_space<smem>>
    %367 = vector.broadcast %366 : f32 to vector<1x16xf32>
    %368 = arith.mulf %235, %367 : vector<1x16xf32>
    %369 = arith.addf %361, %368 : vector<1x16xf32>
    %c1_181 = arith.constant 1 : index
    %c4_182 = arith.constant 4 : index
    %370 = memref.load %arg9[%c1_181, %c4_182] : memref<4x8xf32, #tpu.memory_space<smem>>
    %371 = vector.broadcast %370 : f32 to vector<1x16xf32>
    %372 = arith.mulf %243, %371 : vector<1x16xf32>
    %373 = arith.addf %365, %372 : vector<1x16xf32>
    %c1_183 = arith.constant 1 : index
    %c5_184 = arith.constant 5 : index
    %374 = memref.load %arg7[%c1_183, %c5_184] : memref<4x8xf32, #tpu.memory_space<smem>>
    %375 = vector.broadcast %374 : f32 to vector<1x16xf32>
    %376 = arith.mulf %236, %375 : vector<1x16xf32>
    %377 = arith.addf %369, %376 : vector<1x16xf32>
    %c1_185 = arith.constant 1 : index
    %c5_186 = arith.constant 5 : index
    %378 = memref.load %arg9[%c1_185, %c5_186] : memref<4x8xf32, #tpu.memory_space<smem>>
    %379 = vector.broadcast %378 : f32 to vector<1x16xf32>
    %380 = arith.mulf %244, %379 : vector<1x16xf32>
    %381 = arith.addf %373, %380 : vector<1x16xf32>
    %c1_187 = arith.constant 1 : index
    %c6_188 = arith.constant 6 : index
    %382 = memref.load %arg7[%c1_187, %c6_188] : memref<4x8xf32, #tpu.memory_space<smem>>
    %383 = vector.broadcast %382 : f32 to vector<1x16xf32>
    %384 = arith.mulf %237, %383 : vector<1x16xf32>
    %385 = arith.addf %377, %384 : vector<1x16xf32>
    %c1_189 = arith.constant 1 : index
    %c6_190 = arith.constant 6 : index
    %386 = memref.load %arg9[%c1_189, %c6_190] : memref<4x8xf32, #tpu.memory_space<smem>>
    %387 = vector.broadcast %386 : f32 to vector<1x16xf32>
    %388 = arith.mulf %245, %387 : vector<1x16xf32>
    %389 = arith.addf %381, %388 : vector<1x16xf32>
    %c1_191 = arith.constant 1 : index
    %c7_192 = arith.constant 7 : index
    %390 = memref.load %arg7[%c1_191, %c7_192] : memref<4x8xf32, #tpu.memory_space<smem>>
    %391 = vector.broadcast %390 : f32 to vector<1x16xf32>
    %392 = arith.mulf %238, %391 : vector<1x16xf32>
    %393 = arith.addf %385, %392 : vector<1x16xf32>
    %c1_193 = arith.constant 1 : index
    %c7_194 = arith.constant 7 : index
    %394 = memref.load %arg9[%c1_193, %c7_194] : memref<4x8xf32, #tpu.memory_space<smem>>
    %395 = vector.broadcast %394 : f32 to vector<1x16xf32>
    %396 = arith.mulf %246, %395 : vector<1x16xf32>
    %397 = arith.addf %389, %396 : vector<1x16xf32>
    %c1_195 = arith.constant 1 : index
    %398 = memref.load %arg8[%c1_195] : memref<4xf32, #tpu.memory_space<smem>>
    %399 = vector.broadcast %398 : f32 to vector<1x16xf32>
    %400 = arith.addf %393, %399 : vector<1x16xf32>
    %cst_196 = arith.constant 0.000000e+00 : f32
    %401 = vector.broadcast %cst_196 : f32 to vector<1x16xf32>
    %402 = arith.subf %401, %400 : vector<1x16xf32>
    %403 = math.exp %402 : vector<1x16xf32>
    %cst_197 = arith.constant 1.000000e+00 : f32
    %404 = vector.broadcast %cst_197 : f32 to vector<1x16xf32>
    %405 = arith.addf %404, %403 : vector<1x16xf32>
    %406 = tpu.reciprocal %405 : vector<1x16xf32> -> vector<1x16xf32>
    %c1_198 = arith.constant 1 : index
    %407 = memref.load %arg10[%c1_198] : memref<4xf32, #tpu.memory_space<smem>>
    %408 = vector.broadcast %407 : f32 to vector<1x16xf32>
    %409 = arith.addf %397, %408 : vector<1x16xf32>
    %cst_199 = arith.constant 0.000000e+00 : f32
    %410 = vector.broadcast %cst_199 : f32 to vector<1x16xf32>
    %411 = arith.subf %410, %409 : vector<1x16xf32>
    %412 = math.exp %411 : vector<1x16xf32>
    %cst_200 = arith.constant 1.000000e+00 : f32
    %413 = vector.broadcast %cst_200 : f32 to vector<1x16xf32>
    %414 = arith.addf %413, %412 : vector<1x16xf32>
    %415 = tpu.reciprocal %414 : vector<1x16xf32> -> vector<1x16xf32>
    %cst_201 = arith.constant dense<0.000000e+00> : vector<1x256xf32>
    %416 = tpu.matmul %415, %2, %cst_201 {dimension_numbers = #tpu.dot_dimension_numbers<[1], [0], [0], [1], [0, 0, 1, 1], [], []>} : vector<1x16xf32>, vector<16x256xf32>, vector<1x256xf32> -> vector<1x256xf32>
    %c0_202 = arith.constant 0 : index
    %c1_203 = arith.constant 1 : index
    %c0_204 = arith.constant 0 : index
    %417 = vector.load %arg1[%c0_202, %c1_203, %c0_204] : memref<1x4x256xf32, #tpu.memory_space<vmem>>, vector<1x1x256xf32>
    %418 = vector.shape_cast %417 : vector<1x1x256xf32> to vector<1x256xf32>
    %419 = arith.mulf %418, %416 : vector<1x256xf32>
    %cst_205 = arith.constant dense<0.000000e+00> : vector<1x256xf32>
    %420 = tpu.matmul %406, %1, %cst_205 {dimension_numbers = #tpu.dot_dimension_numbers<[1], [0], [0], [1], [0, 0, 1, 1], [], []>} : vector<1x16xf32>, vector<16x256xf32>, vector<1x256xf32> -> vector<1x256xf32>
    %421 = arith.mulf %419, %420 : vector<1x256xf32>
    %c0_206 = arith.constant 0 : index
    %c1_207 = arith.constant 1 : index
    %c0_208 = arith.constant 0 : index
    %422 = vector.load %arg11[%c0_206, %c1_207, %c0_208] : memref<1x4x256xf32, #tpu.memory_space<vmem>>, vector<1x1x256xf32>
    %423 = vector.shape_cast %422 : vector<1x1x256xf32> to vector<1x256xf32>
    %424 = vector.shape_cast %421 : vector<1x256xf32> to vector<1x1x256xf32>
    tpu.vector_store %arg11[%c0_206, %c1_207, %c0_208], %424 {strides = array<i32>} : memref<1x4x256xf32, #tpu.memory_space<vmem>>, vector<1x1x256xf32>,
    %c2_209 = arith.constant 2 : index
    %c0_210 = arith.constant 0 : index
    %425 = memref.load %arg7[%c2_209, %c0_210] : memref<4x8xf32, #tpu.memory_space<smem>>
    %426 = vector.broadcast %425 : f32 to vector<1x16xf32>
    %427 = arith.mulf %231, %426 : vector<1x16xf32>
    %c2_211 = arith.constant 2 : index
    %c0_212 = arith.constant 0 : index
    %428 = memref.load %arg9[%c2_211, %c0_212] : memref<4x8xf32, #tpu.memory_space<smem>>
    %429 = vector.broadcast %428 : f32 to vector<1x16xf32>
    %430 = arith.mulf %239, %429 : vector<1x16xf32>
    %c2_213 = arith.constant 2 : index
    %c1_214 = arith.constant 1 : index
    %431 = memref.load %arg7[%c2_213, %c1_214] : memref<4x8xf32, #tpu.memory_space<smem>>
    %432 = vector.broadcast %431 : f32 to vector<1x16xf32>
    %433 = arith.mulf %232, %432 : vector<1x16xf32>
    %434 = arith.addf %427, %433 : vector<1x16xf32>
    %c2_215 = arith.constant 2 : index
    %c1_216 = arith.constant 1 : index
    %435 = memref.load %arg9[%c2_215, %c1_216] : memref<4x8xf32, #tpu.memory_space<smem>>
    %436 = vector.broadcast %435 : f32 to vector<1x16xf32>
    %437 = arith.mulf %240, %436 : vector<1x16xf32>
    %438 = arith.addf %430, %437 : vector<1x16xf32>
    %c2_217 = arith.constant 2 : index
    %c2_218 = arith.constant 2 : index
    %439 = memref.load %arg7[%c2_217, %c2_218] : memref<4x8xf32, #tpu.memory_space<smem>>
    %440 = vector.broadcast %439 : f32 to vector<1x16xf32>
    %441 = arith.mulf %233, %440 : vector<1x16xf32>
    %442 = arith.addf %434, %441 : vector<1x16xf32>
    %c2_219 = arith.constant 2 : index
    %c2_220 = arith.constant 2 : index
    %443 = memref.load %arg9[%c2_219, %c2_220] : memref<4x8xf32, #tpu.memory_space<smem>>
    %444 = vector.broadcast %443 : f32 to vector<1x16xf32>
    %445 = arith.mulf %241, %444 : vector<1x16xf32>
    %446 = arith.addf %438, %445 : vector<1x16xf32>
    %c2_221 = arith.constant 2 : index
    %c3_222 = arith.constant 3 : index
    %447 = memref.load %arg7[%c2_221, %c3_222] : memref<4x8xf32, #tpu.memory_space<smem>>
    %448 = vector.broadcast %447 : f32 to vector<1x16xf32>
    %449 = arith.mulf %234, %448 : vector<1x16xf32>
    %450 = arith.addf %442, %449 : vector<1x16xf32>
    %c2_223 = arith.constant 2 : index
    %c3_224 = arith.constant 3 : index
    %451 = memref.load %arg9[%c2_223, %c3_224] : memref<4x8xf32, #tpu.memory_space<smem>>
    %452 = vector.broadcast %451 : f32 to vector<1x16xf32>
    %453 = arith.mulf %242, %452 : vector<1x16xf32>
    %454 = arith.addf %446, %453 : vector<1x16xf32>
    %c2_225 = arith.constant 2 : index
    %c4_226 = arith.constant 4 : index
    %455 = memref.load %arg7[%c2_225, %c4_226] : memref<4x8xf32, #tpu.memory_space<smem>>
    %456 = vector.broadcast %455 : f32 to vector<1x16xf32>
    %457 = arith.mulf %235, %456 : vector<1x16xf32>
    %458 = arith.addf %450, %457 : vector<1x16xf32>
    %c2_227 = arith.constant 2 : index
    %c4_228 = arith.constant 4 : index
    %459 = memref.load %arg9[%c2_227, %c4_228] : memref<4x8xf32, #tpu.memory_space<smem>>
    %460 = vector.broadcast %459 : f32 to vector<1x16xf32>
    %461 = arith.mulf %243, %460 : vector<1x16xf32>
    %462 = arith.addf %454, %461 : vector<1x16xf32>
    %c2_229 = arith.constant 2 : index
    %c5_230 = arith.constant 5 : index
    %463 = memref.load %arg7[%c2_229, %c5_230] : memref<4x8xf32, #tpu.memory_space<smem>>
    %464 = vector.broadcast %463 : f32 to vector<1x16xf32>
    %465 = arith.mulf %236, %464 : vector<1x16xf32>
    %466 = arith.addf %458, %465 : vector<1x16xf32>
    %c2_231 = arith.constant 2 : index
    %c5_232 = arith.constant 5 : index
    %467 = memref.load %arg9[%c2_231, %c5_232] : memref<4x8xf32, #tpu.memory_space<smem>>
    %468 = vector.broadcast %467 : f32 to vector<1x16xf32>
    %469 = arith.mulf %244, %468 : vector<1x16xf32>
    %470 = arith.addf %462, %469 : vector<1x16xf32>
    %c2_233 = arith.constant 2 : index
    %c6_234 = arith.constant 6 : index
    %471 = memref.load %arg7[%c2_233, %c6_234] : memref<4x8xf32, #tpu.memory_space<smem>>
    %472 = vector.broadcast %471 : f32 to vector<1x16xf32>
    %473 = arith.mulf %237, %472 : vector<1x16xf32>
    %474 = arith.addf %466, %473 : vector<1x16xf32>
    %c2_235 = arith.constant 2 : index
    %c6_236 = arith.constant 6 : index
    %475 = memref.load %arg9[%c2_235, %c6_236] : memref<4x8xf32, #tpu.memory_space<smem>>
    %476 = vector.broadcast %475 : f32 to vector<1x16xf32>
    %477 = arith.mulf %245, %476 : vector<1x16xf32>
    %478 = arith.addf %470, %477 : vector<1x16xf32>
    %c2_237 = arith.constant 2 : index
    %c7_238 = arith.constant 7 : index
    %479 = memref.load %arg7[%c2_237, %c7_238] : memref<4x8xf32, #tpu.memory_space<smem>>
    %480 = vector.broadcast %479 : f32 to vector<1x16xf32>
    %481 = arith.mulf %238, %480 : vector<1x16xf32>
    %482 = arith.addf %474, %481 : vector<1x16xf32>
    %c2_239 = arith.constant 2 : index
    %c7_240 = arith.constant 7 : index
    %483 = memref.load %arg9[%c2_239, %c7_240] : memref<4x8xf32, #tpu.memory_space<smem>>
    %484 = vector.broadcast %483 : f32 to vector<1x16xf32>
    %485 = arith.mulf %246, %484 : vector<1x16xf32>
    %486 = arith.addf %478, %485 : vector<1x16xf32>
    %c2_241 = arith.constant 2 : index
    %487 = memref.load %arg8[%c2_241] : memref<4xf32, #tpu.memory_space<smem>>
    %488 = vector.broadcast %487 : f32 to vector<1x16xf32>
    %489 = arith.addf %482, %488 : vector<1x16xf32>
    %cst_242 = arith.constant 0.000000e+00 : f32
    %490 = vector.broadcast %cst_242 : f32 to vector<1x16xf32>
    %491 = arith.subf %490, %489 : vector<1x16xf32>
    %492 = math.exp %491 : vector<1x16xf32>
    %cst_243 = arith.constant 1.000000e+00 : f32
    %493 = vector.broadcast %cst_243 : f32 to vector<1x16xf32>
    %494 = arith.addf %493, %492 : vector<1x16xf32>
    %495 = tpu.reciprocal %494 : vector<1x16xf32> -> vector<1x16xf32>
    %c2_244 = arith.constant 2 : index
    %496 = memref.load %arg10[%c2_244] : memref<4xf32, #tpu.memory_space<smem>>
    %497 = vector.broadcast %496 : f32 to vector<1x16xf32>
    %498 = arith.addf %486, %497 : vector<1x16xf32>
    %cst_245 = arith.constant 0.000000e+00 : f32
    %499 = vector.broadcast %cst_245 : f32 to vector<1x16xf32>
    %500 = arith.subf %499, %498 : vector<1x16xf32>
    %501 = math.exp %500 : vector<1x16xf32>
    %cst_246 = arith.constant 1.000000e+00 : f32
    %502 = vector.broadcast %cst_246 : f32 to vector<1x16xf32>
    %503 = arith.addf %502, %501 : vector<1x16xf32>
    %504 = tpu.reciprocal %503 : vector<1x16xf32> -> vector<1x16xf32>
    %cst_247 = arith.constant dense<0.000000e+00> : vector<1x256xf32>
    %505 = tpu.matmul %504, %2, %cst_247 {dimension_numbers = #tpu.dot_dimension_numbers<[1], [0], [0], [1], [0, 0, 1, 1], [], []>} : vector<1x16xf32>, vector<16x256xf32>, vector<1x256xf32> -> vector<1x256xf32>
    %c0_248 = arith.constant 0 : index
    %c2_249 = arith.constant 2 : index
    %c0_250 = arith.constant 0 : index
    %506 = vector.load %arg1[%c0_248, %c2_249, %c0_250] : memref<1x4x256xf32, #tpu.memory_space<vmem>>, vector<1x1x256xf32>
    %507 = vector.shape_cast %506 : vector<1x1x256xf32> to vector<1x256xf32>
    %508 = arith.mulf %507, %505 : vector<1x256xf32>
    %cst_251 = arith.constant dense<0.000000e+00> : vector<1x256xf32>
    %509 = tpu.matmul %495, %1, %cst_251 {dimension_numbers = #tpu.dot_dimension_numbers<[1], [0], [0], [1], [0, 0, 1, 1], [], []>} : vector<1x16xf32>, vector<16x256xf32>, vector<1x256xf32> -> vector<1x256xf32>
    %510 = arith.mulf %508, %509 : vector<1x256xf32>
    %c0_252 = arith.constant 0 : index
    %c2_253 = arith.constant 2 : index
    %c0_254 = arith.constant 0 : index
    %511 = vector.load %arg11[%c0_252, %c2_253, %c0_254] : memref<1x4x256xf32, #tpu.memory_space<vmem>>, vector<1x1x256xf32>
    %512 = vector.shape_cast %511 : vector<1x1x256xf32> to vector<1x256xf32>
    %513 = vector.shape_cast %510 : vector<1x256xf32> to vector<1x1x256xf32>
    tpu.vector_store %arg11[%c0_252, %c2_253, %c0_254], %513 {strides = array<i32>} : memref<1x4x256xf32, #tpu.memory_space<vmem>>, vector<1x1x256xf32>,
    %c3_255 = arith.constant 3 : index
    %c0_256 = arith.constant 0 : index
    %514 = memref.load %arg7[%c3_255, %c0_256] : memref<4x8xf32, #tpu.memory_space<smem>>
    %515 = vector.broadcast %514 : f32 to vector<1x16xf32>
    %516 = arith.mulf %231, %515 : vector<1x16xf32>
    %c3_257 = arith.constant 3 : index
    %c0_258 = arith.constant 0 : index
    %517 = memref.load %arg9[%c3_257, %c0_258] : memref<4x8xf32, #tpu.memory_space<smem>>
    %518 = vector.broadcast %517 : f32 to vector<1x16xf32>
    %519 = arith.mulf %239, %518 : vector<1x16xf32>
    %c3_259 = arith.constant 3 : index
    %c1_260 = arith.constant 1 : index
    %520 = memref.load %arg7[%c3_259, %c1_260] : memref<4x8xf32, #tpu.memory_space<smem>>
    %521 = vector.broadcast %520 : f32 to vector<1x16xf32>
    %522 = arith.mulf %232, %521 : vector<1x16xf32>
    %523 = arith.addf %516, %522 : vector<1x16xf32>
    %c3_261 = arith.constant 3 : index
    %c1_262 = arith.constant 1 : index
    %524 = memref.load %arg9[%c3_261, %c1_262] : memref<4x8xf32, #tpu.memory_space<smem>>
    %525 = vector.broadcast %524 : f32 to vector<1x16xf32>
    %526 = arith.mulf %240, %525 : vector<1x16xf32>
    %527 = arith.addf %519, %526 : vector<1x16xf32>
    %c3_263 = arith.constant 3 : index
    %c2_264 = arith.constant 2 : index
    %528 = memref.load %arg7[%c3_263, %c2_264] : memref<4x8xf32, #tpu.memory_space<smem>>
    %529 = vector.broadcast %528 : f32 to vector<1x16xf32>
    %530 = arith.mulf %233, %529 : vector<1x16xf32>
    %531 = arith.addf %523, %530 : vector<1x16xf32>
    %c3_265 = arith.constant 3 : index
    %c2_266 = arith.constant 2 : index
    %532 = memref.load %arg9[%c3_265, %c2_266] : memref<4x8xf32, #tpu.memory_space<smem>>
    %533 = vector.broadcast %532 : f32 to vector<1x16xf32>
    %534 = arith.mulf %241, %533 : vector<1x16xf32>
    %535 = arith.addf %527, %534 : vector<1x16xf32>
    %c3_267 = arith.constant 3 : index
    %c3_268 = arith.constant 3 : index
    %536 = memref.load %arg7[%c3_267, %c3_268] : memref<4x8xf32, #tpu.memory_space<smem>>
    %537 = vector.broadcast %536 : f32 to vector<1x16xf32>
    %538 = arith.mulf %234, %537 : vector<1x16xf32>
    %539 = arith.addf %531, %538 : vector<1x16xf32>
    %c3_269 = arith.constant 3 : index
    %c3_270 = arith.constant 3 : index
    %540 = memref.load %arg9[%c3_269, %c3_270] : memref<4x8xf32, #tpu.memory_space<smem>>
    %541 = vector.broadcast %540 : f32 to vector<1x16xf32>
    %542 = arith.mulf %242, %541 : vector<1x16xf32>
    %543 = arith.addf %535, %542 : vector<1x16xf32>
    %c3_271 = arith.constant 3 : index
    %c4_272 = arith.constant 4 : index
    %544 = memref.load %arg7[%c3_271, %c4_272] : memref<4x8xf32, #tpu.memory_space<smem>>
    %545 = vector.broadcast %544 : f32 to vector<1x16xf32>
    %546 = arith.mulf %235, %545 : vector<1x16xf32>
    %547 = arith.addf %539, %546 : vector<1x16xf32>
    %c3_273 = arith.constant 3 : index
    %c4_274 = arith.constant 4 : index
    %548 = memref.load %arg9[%c3_273, %c4_274] : memref<4x8xf32, #tpu.memory_space<smem>>
    %549 = vector.broadcast %548 : f32 to vector<1x16xf32>
    %550 = arith.mulf %243, %549 : vector<1x16xf32>
    %551 = arith.addf %543, %550 : vector<1x16xf32>
    %c3_275 = arith.constant 3 : index
    %c5_276 = arith.constant 5 : index
    %552 = memref.load %arg7[%c3_275, %c5_276] : memref<4x8xf32, #tpu.memory_space<smem>>
    %553 = vector.broadcast %552 : f32 to vector<1x16xf32>
    %554 = arith.mulf %236, %553 : vector<1x16xf32>
    %555 = arith.addf %547, %554 : vector<1x16xf32>
    %c3_277 = arith.constant 3 : index
    %c5_278 = arith.constant 5 : index
    %556 = memref.load %arg9[%c3_277, %c5_278] : memref<4x8xf32, #tpu.memory_space<smem>>
    %557 = vector.broadcast %556 : f32 to vector<1x16xf32>
    %558 = arith.mulf %244, %557 : vector<1x16xf32>
    %559 = arith.addf %551, %558 : vector<1x16xf32>
    %c3_279 = arith.constant 3 : index
    %c6_280 = arith.constant 6 : index
    %560 = memref.load %arg7[%c3_279, %c6_280] : memref<4x8xf32, #tpu.memory_space<smem>>
    %561 = vector.broadcast %560 : f32 to vector<1x16xf32>
    %562 = arith.mulf %237, %561 : vector<1x16xf32>
    %563 = arith.addf %555, %562 : vector<1x16xf32>
    %c3_281 = arith.constant 3 : index
    %c6_282 = arith.constant 6 : index
    %564 = memref.load %arg9[%c3_281, %c6_282] : memref<4x8xf32, #tpu.memory_space<smem>>
    %565 = vector.broadcast %564 : f32 to vector<1x16xf32>
    %566 = arith.mulf %245, %565 : vector<1x16xf32>
    %567 = arith.addf %559, %566 : vector<1x16xf32>
    %c3_283 = arith.constant 3 : index
    %c7_284 = arith.constant 7 : index
    %568 = memref.load %arg7[%c3_283, %c7_284] : memref<4x8xf32, #tpu.memory_space<smem>>
    %569 = vector.broadcast %568 : f32 to vector<1x16xf32>
    %570 = arith.mulf %238, %569 : vector<1x16xf32>
    %571 = arith.addf %563, %570 : vector<1x16xf32>
    %c3_285 = arith.constant 3 : index
    %c7_286 = arith.constant 7 : index
    %572 = memref.load %arg9[%c3_285, %c7_286] : memref<4x8xf32, #tpu.memory_space<smem>>
    %573 = vector.broadcast %572 : f32 to vector<1x16xf32>
    %574 = arith.mulf %246, %573 : vector<1x16xf32>
    %575 = arith.addf %567, %574 : vector<1x16xf32>
    %c3_287 = arith.constant 3 : index
    %576 = memref.load %arg8[%c3_287] : memref<4xf32, #tpu.memory_space<smem>>
    %577 = vector.broadcast %576 : f32 to vector<1x16xf32>
    %578 = arith.addf %571, %577 : vector<1x16xf32>
    %cst_288 = arith.constant 0.000000e+00 : f32
    %579 = vector.broadcast %cst_288 : f32 to vector<1x16xf32>
    %580 = arith.subf %579, %578 : vector<1x16xf32>
    %581 = math.exp %580 : vector<1x16xf32>
    %cst_289 = arith.constant 1.000000e+00 : f32
    %582 = vector.broadcast %cst_289 : f32 to vector<1x16xf32>
    %583 = arith.addf %582, %581 : vector<1x16xf32>
    %584 = tpu.reciprocal %583 : vector<1x16xf32> -> vector<1x16xf32>
    %c3_290 = arith.constant 3 : index
    %585 = memref.load %arg10[%c3_290] : memref<4xf32, #tpu.memory_space<smem>>
    %586 = vector.broadcast %585 : f32 to vector<1x16xf32>
    %587 = arith.addf %575, %586 : vector<1x16xf32>
    %cst_291 = arith.constant 0.000000e+00 : f32
    %588 = vector.broadcast %cst_291 : f32 to vector<1x16xf32>
    %589 = arith.subf %588, %587 : vector<1x16xf32>
    %590 = math.exp %589 : vector<1x16xf32>
    %cst_292 = arith.constant 1.000000e+00 : f32
    %591 = vector.broadcast %cst_292 : f32 to vector<1x16xf32>
    %592 = arith.addf %591, %590 : vector<1x16xf32>
    %593 = tpu.reciprocal %592 : vector<1x16xf32> -> vector<1x16xf32>
    %cst_293 = arith.constant dense<0.000000e+00> : vector<1x256xf32>
    %594 = tpu.matmul %593, %2, %cst_293 {dimension_numbers = #tpu.dot_dimension_numbers<[1], [0], [0], [1], [0, 0, 1, 1], [], []>} : vector<1x16xf32>, vector<16x256xf32>, vector<1x256xf32> -> vector<1x256xf32>
    %c0_294 = arith.constant 0 : index
    %c3_295 = arith.constant 3 : index
    %c0_296 = arith.constant 0 : index
    %595 = vector.load %arg1[%c0_294, %c3_295, %c0_296] : memref<1x4x256xf32, #tpu.memory_space<vmem>>, vector<1x1x256xf32>
    %596 = vector.shape_cast %595 : vector<1x1x256xf32> to vector<1x256xf32>
    %597 = arith.mulf %596, %594 : vector<1x256xf32>
    %cst_297 = arith.constant dense<0.000000e+00> : vector<1x256xf32>
    %598 = tpu.matmul %584, %1, %cst_297 {dimension_numbers = #tpu.dot_dimension_numbers<[1], [0], [0], [1], [0, 0, 1, 1], [], []>} : vector<1x16xf32>, vector<16x256xf32>, vector<1x256xf32> -> vector<1x256xf32>
    %599 = arith.mulf %597, %598 : vector<1x256xf32>
    %c0_298 = arith.constant 0 : index
    %c3_299 = arith.constant 3 : index
    %c0_300 = arith.constant 0 : index
    %600 = vector.load %arg11[%c0_298, %c3_299, %c0_300] : memref<1x4x256xf32, #tpu.memory_space<vmem>>, vector<1x1x256xf32>
    %601 = vector.shape_cast %600 : vector<1x1x256xf32> to vector<1x256xf32>
    %602 = vector.shape_cast %599 : vector<1x256xf32> to vector<1x1x256xf32>
    tpu.vector_store %arg11[%c0_298, %c3_299, %c0_300], %602 {strides = array<i32>} : memref<1x4x256xf32, #tpu.memory_space<vmem>>, vector<1x1x256xf32>,
    return
  }
  func.func @transform_0(%arg0: i32) -> (i32, i32, i32) {
    %c0_i32 = arith.constant 0 : i32
    %c0_i32_0 = arith.constant 0 : i32
    %c0_i32_1 = arith.constant 0 : i32
    return %arg0, %c0_i32, %c0_i32_0 : i32, i32, i32
  }
  func.func @transform_1(%arg0: i32) -> (i32, i32) {
    %c0_i32 = arith.constant 0 : i32
    %c0_i32_0 = arith.constant 0 : i32
    %c0_i32_1 = arith.constant 0 : i32
    return %c0_i32, %c0_i32_0 : i32, i32
  }
  func.func @transform_2(%arg0: i32) -> (i32, i32) {
    %c0_i32 = arith.constant 0 : i32
    %c0_i32_0 = arith.constant 0 : i32
    %c0_i32_1 = arith.constant 0 : i32
    return %c0_i32, %c0_i32_0 : i32, i32
  }
  func.func @transform_3(%arg0: i32) -> (i32, i32) {
    %c0_i32 = arith.constant 0 : i32
    %c0_i32_0 = arith.constant 0 : i32
    %c0_i32_1 = arith.constant 0 : i32
    return %c0_i32, %c0_i32_0 : i32, i32
  }
  func.func @transform_4(%arg0: i32) -> (i32, i32) {
    %c0_i32 = arith.constant 0 : i32
    %c0_i32_0 = arith.constant 0 : i32
    %c0_i32_1 = arith.constant 0 : i32
    return %c0_i32, %c0_i32_0 : i32, i32
  }
  func.func @transform_5(%arg0: i32) -> i32 {
    %c0_i32 = arith.constant 0 : i32
    %c0_i32_0 = arith.constant 0 : i32
    return %c0_i32 : i32
  }
  func.func @transform_6(%arg0: i32) -> (i32, i32) {
    %c0_i32 = arith.constant 0 : i32
    %c0_i32_0 = arith.constant 0 : i32
    %c0_i32_1 = arith.constant 0 : i32
    return %c0_i32, %c0_i32_0 : i32, i32
  }
  func.func @transform_7(%arg0: i32) -> i32 {
    %c0_i32 = arith.constant 0 : i32
    %c0_i32_0 = arith.constant 0 : i32
    return %c0_i32 : i32
  }
  func.func @transform_8(%arg0: i32) -> (i32, i32) {
    %c0_i32 = arith.constant 0 : i32
    %c0_i32_0 = arith.constant 0 : i32
    %c0_i32_1 = arith.constant 0 : i32
    return %c0_i32, %c0_i32_0 : i32, i32
  }
  func.func @transform_9(%arg0: i32) -> i32 {
    %c0_i32 = arith.constant 0 : i32
    %c0_i32_0 = arith.constant 0 : i32
    return %c0_i32 : i32
  }
  func.func @transform_10(%arg0: i32) -> (i32, i32, i32) {
    %c0_i32 = arith.constant 0 : i32
    %c0_i32_0 = arith.constant 0 : i32
    %c0_i32_1 = arith.constant 0 : i32
    return %arg0, %c0_i32, %c0_i32_0 : i32, i32, i32
  }
}

</mosaic_0001>

<bundles_post_ra>
// kernel: tpu_custom_call.1
= control target key start
LH: loop header
LB: loop body
LE: loop exit
PB: predicated region body
PF: predicated region fallthrough
CT: control target
= control target key end

     0   :  { %s4088_s0 = inlined_call_operand.vmem [shape: f32[2,4,256], index: 0, kind: input, shape index: {}]   ;;  %s4089_s1 = inlined_call_operand.vmem [shape: f32[256,32], index: 1, kind: input, shape index: {}]   ;;  %s4090_s2 = inlined_call_operand.vmem [shape: f32[16,256], index: 2, kind: input, shape index: {}]   ;;  %s4091_s3 = inlined_call_operand.vmem [shape: f32[16,256], index: 3, kind: input, shape index: {}]   ;;  %s4092_s4 = inlined_call_operand.vmem [shape: f32[8,4], index: 4, kind: input, shape index: {}]   ;;  %s4093_s5 = inlined_call_operand.vmem [shape: f32[8], index: 5, kind: input, shape index: {}]   ;;  %s4094_s6 = inlined_call_operand.vmem [shape: f32[4,8], index: 6, kind: input, shape index: {}]   ;;  %s4095_s7 = inlined_call_operand.vmem [shape: f32[4], index: 7, kind: input, shape index: {}]   ;;  %s4096_s8 = inlined_call_operand.vmem [shape: f32[4,8], index: 8, kind: input, shape index: {}]   ;;  %s4097_s9 = inlined_call_operand.vmem [shape: f32[4], index: 9, kind: input, shape index: {}]   ;;  %s4098_s10 = inlined_call_operand.hbm [shape: f32[2,4,256], index: 10, kind: output, shape index: {}]  }
   0x1   :  { %4212 = sst [smem:[#allocation116_spill]] %s4088_s0 }
   0x2   :  { %4213 = sst [smem:[#allocation117_spill]] %s4089_s1 }
   0x3   :  { %4214 = sst [smem:[#allocation118_spill]] %s4090_s2 }
   0x4   :  { %4215 = sst [smem:[#allocation119_spill]] %s4091_s3 }
   0x5   :  { %4216 = sst [smem:[#allocation120_spill]] %s4092_s4 }
   0x6   :  { %4217 = sst [smem:[#allocation121_spill]] %s4093_s5 }
   0x7   :  { %4218 = sst [smem:[#allocation122_spill]] %s4094_s6 }
   0x8   :  { %4219 = sst [smem:[#allocation123_spill]] %s4095_s7 }
   0x9   :  { %4220 = sst [smem:[#allocation124_spill]] %s4096_s8 }
   0xa   :  { %4221 = sst [smem:[#allocation125_spill]] %s4097_s9 }
   0xb   :  { %4222 = sst [smem:[#allocation126_spill]] %s4098_s10 }
   0xc   :  { %15 = vsyncpa [#allocation4], 0 }
   0xd   :  { %16 = vsyncpa [#allocation6], 0 }
   0xe   :  { %17 = vsyncpa [#allocation9], 0 }
   0xf   :  { %18 = vsyncpa [#allocation12], 0 }
  0x10   :  { %19 = vsyncpa [#allocation3], 0 }
  0x11   :  { %21 = vsyncpa [#allocation3 + $0x1], 0  ;;  %s2861_s13 = smov 0   ;;  %s2863_s14 = smov 0  }
  0x12   :  { %s2865_s15 = smov 0   ;;  %s2867_s16 = smov 0  }
  0x13 LB: > { %4223 = sst [smem:[#allocation19_spill]] %s2782_s13  ;;  %s2882_s17 = sadd.s32 4294967295, %s2794_s16   ;;  %s2794_s16 = sphi %s2867_s16, %s4560_s16   ;;  %s2790_s15 = sphi %s2865_s15, %s4563_s15   ;;  %s2786_s14 = sphi %s2863_s14, %s4562_s14   ;;  %s2782_s13 = sphi %s2861_s13, %s4561_s13  }
  0x14   : > { %4224 = sst [smem:[#allocation20_spill]] %s2786_s14  ;;  %s2203_s18 = sadd.s32 4294967294, %s2794_s16  }
  0x15   : > { %4225 = sst [smem:[#allocation21_spill]] %s2790_s15  ;;  %s2886_s19 = sadd.s32 1, %s2794_s16  }
  0x16   : > { %4226 = sst [smem:[#allocation22_spill]] %s2794_s16  ;;  %s249_s20 = sadd.s32 1, %s2790_s15 }
  0x17   : > { %4227 = sst [smem:[#allocation23_spill]] %s2882_s17  ;;  %s246_s21 = ssub.s32 %s2794_s16, %s2886_s19 }
  0x18   : > { %4228 = sst [smem:[#allocation24_spill]] %s2886_s19  ;;  %p259_p0 = scmp.ne.s32.totalorder %s2790_s15, %s2786_s14 }
  0x19   : > { %p247_p1 = scmp.eq.s32.totalorder %s246_s21, 0  ;;  %p260_p2 = scmp.eq.s32.totalorder %s2882_s17, 1 }
  0x1a   : > { %p265_p3 = scmp.ne.s32.totalorder %s2786_s14, %s2782_s13  ;;  %p266_p4 = scmp.eq.s32.totalorder %s2203_s18, 1 }
  0x1b   : > { %s2897_s22 = scalar_select %p247_p1, %s2790_s15, %s249_s20  }
  0x1c   : > { %p2899_p5 = por %p260_p2, %p259_p0  ;;  %p2903_p6 = por %p266_p4, %p265_p3 }
  0x1d   : > { %4229 = sst [smem:[#allocation25_spill]] %s2897_s22  ;;  %p2204_p7 = scmp.ge.s32.totalorder %s2794_s16, 1 }
  0x1e   : > { %s4230_s23 = scalar_select %p2899_p5, 1, 0 }
  0x1f   : > { %s4232_s24 = scalar_select %p2903_p6, 1, 0 }
  0x20   : > { %4231 = sst [smem:[#allocation26_spill]] %s4230_s23  ;;  %p273_p8 = scmp.lt.s32.totalorder %s2794_s16, 3 }
  0x21   : > { %4233 = sst [smem:[#allocation27_spill]] %s4232_s24  ;;  %p4099_p9 = scmp.eq.s32.totalorder %s2882_s17, 0 }
  0x22   : > { %p2910_p10 = pnand %p2204_p7, %p273_p8  ;;  %s4235_s5 = sld [smem:[#allocation121_spill]] }
  0x23   : > { %s4236_s7 = sld [smem:[#allocation123_spill]] }
  0x24   : > { %s4234_s25 = scalar_select %p2910_p10, 1, 0 }
  0x25   : > { %p2518_p11 = pneg %p2910_p10  ;;  %s4238_s4 = sld [smem:[#allocation120_spill]] }
  0x26   : > { %s4239_s6 = sld [smem:[#allocation122_spill]] }
  0x27   : > { %p2924_p12 = pnand %p4099_p9, %p2518_p11 }
  0x28   : > { %s306_s28 = sshll.u32 %s4235_s5, 4  ;;  %s307_s28 = int_to_ptr.vmem [resolvable:$true] %s306_s28 }
  0x29   : > { %s328_s11 = sshll.u32 %s4236_s7, 4  ;;  %s2628_s22 = scalar_lea.vmem %s307_s28, 16  ;;  %s329_s11 = int_to_ptr.vmem [resolvable:$true] %s328_s11 }
  0x2a   : > { %p2629_p13 = scmp.ne.s32.totalorder %s307_s28, %s2628_s22  ;;  %p2938_p0 = pneg %p2924_p12 }
  0x2b   : > { %s295_s21 = sshll.u32 %s4238_s4, 4  ;;  %p2636_p3 = scmp.lt.s32.totalorder %s307_s28, %s307_s28  ;;  %s2931_s21 = int_to_ptr.vmem [resolvable:$true] %s295_s21 }
  0x2c   : > { %s317_s5 = sshll.u32 %s4239_s6, 4  ;;  %p2631_p1 = pnand %p2938_p0, %p2629_p13  ;;  %s318_s5 = int_to_ptr.vmem [resolvable:$true] %s317_s5 }
  0x2d   : > { %p2637_p4 = scmp.lt.s32.totalorder %s2628_s22, %s2628_s22 }
  0x2e   : > { %p2632_p2 = pneg %p2631_p1 }
  0x2f   : > { %p2638_p7 = por %p2637_p4, %p2636_p3 }
  0x31   : > { %p2639_p8 = pnand %p2638_p7, %p2632_p2 }
  0x33   : > { %2642 = shalt.err (!%p2639_p8)
}
  0x34   : > { %s2796_s30 = smov [#allocation5]   ;;  %s2643_s18 = scalar_lea.vmem %s329_s11, 16 }
  0x35   : > { %2524 = dma.vmem_to_smem (!%p2924_p12), %s307_s28, 16, %s2796_s30, [#allocation6]  }
  0x36   : > { %p2644_p11 = scmp.ne.s32.totalorder %s329_s11, %s2643_s18  ;;  %p2651_p5 = scmp.lt.s32.totalorder %s329_s11, %s329_s11 }
  0x37   : > { %p2652_p10 = scmp.lt.s32.totalorder %s2643_s18, %s2643_s18 }
  0x38   : > { %p2646_p9 = pnand %p2644_p11, %p2938_p0 }
  0x39   : > { %p2653_p13 = por %p2652_p10, %p2651_p5 }
  0x3a   : > { %p2647_p6 = pneg %p2646_p9 }
  0x3c   : > { %p2654_p1 = pnand %p2653_p13, %p2647_p6 }
  0x3e   : > { %2657 = shalt.err (!%p2654_p1)
}
  0x3f   : > { %s2797_s20 = smov [#allocation8]   ;;  %s2658_s22 = scalar_lea.vmem %s2931_s21, 128 }
  0x40   : > { %2530 = dma.vmem_to_smem (!%p2924_p12), %s329_s11, 16, %s2797_s20, [#allocation9]  }
  0x41   : > { %p2659_p2 = scmp.ne.s32.totalorder %s2931_s21, %s2658_s22  ;;  %p2666_p9 = scmp.lt.s32.totalorder %s2931_s21, %s2931_s21 }
  0x42   : > { %p2667_p7 = scmp.lt.s32.totalorder %s2658_s22, %s2658_s22 }
  0x43   : > { %p2661_p3 = pnand %p2659_p2, %p2938_p0 }
  0x44   : > { %p2668_p8 = por %p2667_p7, %p2666_p9 }
  0x45   : > { %p2662_p4 = pneg %p2661_p3 }
  0x47   : > { %p2669_p5 = pnand %p2668_p8, %p2662_p4 }
  0x49   : > { %2672 = shalt.err (!%p2669_p5)
}
  0x4a   : > { %s2798_s28 = smov [#allocation2]   ;;  %s2673_s11 = scalar_lea.vmem %s318_s5, 64 }
  0x4b   : > { %2521 = dma.vmem_to_smem (!%p2924_p12), %s2931_s21, 128, %s2798_s28, [#allocation4]  }
  0x4c   : > { %p2674_p6 = scmp.ne.s32.totalorder %s318_s5, %s2673_s11  ;;  %p2681_p13 = scmp.lt.s32.totalorder %s318_s5, %s318_s5 }
  0x4d   : > { %p2682_p1 = scmp.lt.s32.totalorder %s2673_s11, %s2673_s11 }
  0x4e   : > { %p2676_p10 = pnand %p2674_p6, %p2938_p0 }
  0x4f   : > { %p2683_p2 = por %p2682_p1, %p2681_p13 }
  0x50   : > { %p2677_p11 = pneg %p2676_p10 }
  0x52   : > { %p2684_p3 = pnand %p2683_p2, %p2677_p11 }
  0x54   : > { %2687 = shalt.err (!%p2684_p3)
}
  0x55   : > { %s2799_s30 = smov [#allocation7]   ;;  %s4241_s8 = sld [smem:[#allocation124_spill]] }
  0x56   : > { %2527 = dma.vmem_to_smem (!%p2924_p12), %s318_s5, 64, %s2799_s30, [#allocation6]  }
  0x57   : > { %s4242_s9 = sld [smem:[#allocation125_spill]] }
  0x5b   : > { %s339_s20 = sshll.u32 %s4241_s8, 4  ;;  %s340_s20 = int_to_ptr.vmem [resolvable:$true] %s339_s20 }
  0x5c   : > { %s2688_s27 = scalar_lea.vmem %s340_s20, 64  ;;  %p2696_p8 = scmp.lt.s32.totalorder %s340_s20, %s340_s20 }
  0x5d   : > { %s350_s26 = sshll.u32 %s4242_s9, 4  ;;  %p2689_p4 = scmp.ne.s32.totalorder %s340_s20, %s2688_s27  ;;  %s351_s26 = int_to_ptr.vmem [resolvable:$true] %s350_s26 }
  0x5e   : > { %p2697_p5 = scmp.lt.s32.totalorder %s2688_s27, %s2688_s27 }
  0x5f   : > { %p2691_p9 = pnand %p2689_p4, %p2938_p0 }
  0x60   : > { %p2698_p6 = por %p2697_p5, %p2696_p8 }
  0x61   : > { %p2692_p7 = pneg %p2691_p9 }
  0x63   : > { %p2699_p10 = pnand %p2698_p6, %p2692_p7 }
  0x65   : > { %2702 = shalt.err (!%p2699_p10)
}
  0x66   : > { %s2800_s5 = smov [#allocation10]   ;;  %s2703_s11 = scalar_lea.vmem %s351_s26, 16 }
  0x67   : > { %2533 = dma.vmem_to_smem (!%p2924_p12), %s340_s20, 64, %s2800_s5, [#allocation9]  }
  0x68   : > { %p2704_p11 = scmp.ne.s32.totalorder %s351_s26, %s2703_s11  ;;  %p2711_p2 = scmp.lt.s32.totalorder %s351_s26, %s351_s26 }
  0x69   : > { %p2712_p3 = scmp.lt.s32.totalorder %s2703_s11, %s2703_s11 }
  0x6a   : > { %p2706_p13 = pnand %p2704_p11, %p2938_p0 }
  0x6b   : > { %p2713_p4 = por %p2712_p3, %p2711_p2 }
  0x6c   : > { %p2707_p1 = pneg %p2706_p13 }
  0x6e   : > { %p2714_p9 = pnand %p2713_p4, %p2707_p1 }
  0x70   : > { %2717 = shalt.err (!%p2714_p9)
}
  0x71   : > { %s2801_s30 = smov [#allocation11]   ;;  %p4243_p7 = scmp.ne.s32.totalorder %s4234_s25, 0 }
  0x72   : > { %2536 = dma.vmem_to_smem (!%p2924_p12), %s351_s26, 16, %s2801_s30, [#allocation12]  }
  0x73   : > { %371 = sbr.rel (%p4243_p7) target bundleno = 864 (0x360), region = 60 }
  0x78   : > { %p4244_p8 = scmp.eq.s32.totalorder %s2882_s17, 0 }
  0x7a   : > { %2761 = dma.done.wait (%p4244_p8), [#allocation4], 128   ;;  %p4245_p5 = pmov %p4244_p8 }
  0x7c   : > { %2763 = vsyncadd (%p4245_p5), [#allocation4], 4294967168  ;;  %p4246_p0 = pmov %p4245_p5 }
  0x7e   : > { %2765 = dma.done.wait (%p4246_p0), [#allocation6], 80   ;;  %p4247_p6 = pmov %p4246_p0 }
  0x7f   : > { %p4248_p10 = pmov %p4246_p0 }
  0x80   : > { %2767 = vsyncadd (%p4247_p6), [#allocation6], 4294967216 }
  0x81   : > { %2769 = dma.done.wait (%p4248_p10), [#allocation9], 80   ;;  %p4249_p12 = pmov %p4246_p0 }
  0x82   : > { %p4250_p11 = pmov %p4246_p0 }
  0x83   : > { %2771 = vsyncadd (%p4249_p12), [#allocation9], 4294967216 }
  0x84   : > { %2773 = dma.done.wait (%p4250_p11), [#allocation12], 16   ;;  %p4251_p13 = pmov %p4246_p0 }
  0x86   : > { %2775 = vsyncadd (%p4251_p13), [#allocation12], 4294967280 }
  0x87   : > { %397 = sfence }
  0x88   : > { %s4252_s1 = sld [smem:[#allocation117_spill]]  ;;  %p430_p1 = scmp.lt.s32.totalorder %s2882_s17, 1  ;;  %v4193_v19 = vlaneseq  ;;  %v4195_v52 = vmov 0.0   ;;  %vm1071_vm0 = vcmask 130048  }
  0x89   : > { %s4253_s0 = sld [smem:[#allocation116_spill]] }
  0x8a   : > { %s431_s5 = scalar_select %p430_p1, %s2882_s17, 1  ;;  %v3157_v24 = vshrl.u32 %v4193_v19, 7 }
  0x8b   : > { %s3315_s20 = sld [smem:[#allocation2]] }
  0x8c   : > { %s2350_s22 = sshll.u32 %s431_s5, 3  ;;  %v3193_v29 = vsub.s32 1, %v3157_v24  ;;  %v3211_v33 = vsub.s32 0, %v3157_v24  ;;  %s3317_s28 = sld [smem:[#allocation2 + $0x80]] }
  0x8d   : > { %s3321_s26 = sld [smem:[#allocation2 + $0x180]] }
  0x8e   : > { %v3002_v0 = vld [vmem:[%s4252_s1 + $0xf8] sm:$0xff]  ;;  %v3012_v2 = vld [vmem:[%s4252_s1 + $0xf0] sm:$0xff]  ;;  %v3026_v4 = vld [vmem:[%s4252_s1 + $0xe8] sm:$0xff]  ;;  %s3323_s27 = sld [smem:[#allocation2 + $0x200]] }
  0x8f   : > { %v3007_v1 = vld [vmem:[%s4252_s1 + $0x78] sm:$0xff]  ;;  %2352 = vmatprep.subr.mxu0 %v3002_v0  ;;  %2387 = vmatprep.subr.mxu1 %v3002_v0  ;;  %v3019_v3 = vld [vmem:[%s4252_s1 + $0x70] sm:$0xff]  ;;  %v3033_v5 = vld [vmem:[%s4252_s1 + $0x68] sm:$0xff]  ;;  %s3176_s29 = scalar_lea.vmem %s4253_s0, %s2350_s22  ;;  %s3319_s22 = sld [smem:[#allocation2 + $0x100]] }
  0x90   : > { %2353 = vmatpush3.msra.mxu0 %v3007_v1  ;;  %2388 = vmatpush3.msra.mxu1 %v3007_v1  ;;  %v3040_v6 = vld [vmem:[%s4252_s1 + $0xe0] sm:$0xff]  ;;  %v3054_v8 = vld [vmem:[%s4252_s1 + $0xd8] sm:$0xff]  ;;  %v3068_v10 = vld [vmem:[%s4252_s1 + $0xd0] sm:$0xff]  ;;  %4254 = sst [smem:[#allocation28_spill]] %s3176_s29 }
  0x91   : > { %2354 = vmatprep.subr.mxu0 %v3012_v2  ;;  %2389 = vmatprep.subr.mxu1 %v3012_v2  ;;  %v3047_v7 = vld [vmem:[%s4252_s1 + $0x60] sm:$0xff]  ;;  %v3061_v9 = vld [vmem:[%s4252_s1 + $0x58] sm:$0xff]  ;;  %v3075_v11 = vld [vmem:[%s4252_s1 + $0x50] sm:$0xff]  ;;  %4255 = sst [smem:[#allocation29_spill]] %s3315_s20  ;;  %v807_v53 = vstv %s3315_s20 }
  0x92   : > { %2355 = vmatpush3.msra.mxu0 %v3019_v3  ;;  %2390 = vmatpush3.msra.mxu1 %v3019_v3  ;;  %v3082_v12 = vld [vmem:[%s4252_s1 + $0xc8] sm:$0xff]  ;;  %v3097_v14 = vld [vmem:[%s4252_s1 + $0xc0] sm:$0xff]  ;;  %v3111_v16 = vld [vmem:[%s4252_s1 + $0xb8] sm:$0xff]  ;;  %4256 = sst [smem:[#allocation30_spill]] %s3317_s28  ;;  %v830_v54 = vstv %s3317_s28 }
  0x93   : > { %2356 = vmatprep.subr.mxu0 %v3026_v4  ;;  %2391 = vmatprep.subr.mxu1 %v3026_v4  ;;  %v3089_v13 = vld [vmem:[%s4252_s1 + $0x48] sm:$0xff]  ;;  %v3104_v15 = vld [vmem:[%s4252_s1 + $0x40] sm:$0xff]  ;;  %v3118_v17 = vld [vmem:[%s4252_s1 + $0x38] sm:$0xff]  ;;  %4258 = sst [smem:[#allocation32_spill]] %s3321_s26  ;;  %v876_v56 = vstv %s3321_s26 }
  0x94   : > { %2357 = vmatpush3.msra.mxu0 %v3033_v5  ;;  %2392 = vmatpush3.msra.mxu1 %v3033_v5  ;;  %v3126_v18 = vld [vmem:[%s4252_s1 + $0xb0] sm:$0xff]  ;;  %v3140_v21 = vld [vmem:[%s4252_s1 + $0xa8] sm:$0xff]  ;;  %v3154_v23 = vld [vmem:[%s4252_s1 + $0xa0] sm:$0xff]  ;;  %4259 = sst [smem:[#allocation33_spill]] %s3323_s27  ;;  %v899_v57 = vstv %s3323_s27 }
  0x95   : > { %2358 = vmatprep.subr.mxu0 %v3040_v6  ;;  %2393 = vmatprep.subr.mxu1 %v3040_v6  ;;  %v3133_v20 = vld [vmem:[%s4252_s1 + $0x30] sm:$0xff]  ;;  %v3147_v22 = vld [vmem:[%s4252_s1 + $0x28] sm:$0xff]  ;;  %v3164_v25 = vld [vmem:[%s4252_s1 + $0x20] sm:$0xff]  ;;  %4257 = sst [smem:[#allocation31_spill]] %s3319_s22  ;;  %v853_v55 = vstv %s3319_s22 }
  0x96   : > { %2359 = vmatpush3.msra.mxu0 %v3047_v7  ;;  %2394 = vmatpush3.msra.mxu1 %v3047_v7  ;;  %v3171_v26 = vld [vmem:[%s4252_s1 + $0x98] sm:$0xff]  ;;  %v3190_v28 = vld [vmem:[%s4252_s1 + $0x90] sm:$0xff]  ;;  %v475_v31 = vld [vmem:[%s3176_s29] ss:$4 sm:$0x3]  ;;  %s3325_s11 = sld [smem:[#allocation2 + $0x280]] }
  0x97   : > { %2360 = vmatprep.subr.mxu0 %v3054_v8  ;;  %2395 = vmatprep.subr.mxu1 %v3054_v8  ;;  %v3183_v27 = vld [vmem:[%s4252_s1 + $0x18] sm:$0xff]  ;;  %v3200_v30 = vld [vmem:[%s4252_s1 + $0x10] sm:$0xff]  ;;  %v3208_v32 = vld [vmem:[%s4252_s1 + $0x88] sm:$0xff]  ;;  %v484_v37 = vrot.slane %v475_v31, %v3193_v29  ;;  %v480_v41 = vrot.slane %v475_v31, %v3211_v33  ;;  %s3327_s5 = sld [smem:[#allocation2 + $0x300]] }
  0x98   : > { %2361 = vmatpush3.msra.mxu0 %v3061_v9  ;;  %2396 = vmatpush3.msra.mxu1 %v3061_v9  ;;  %v2222_v34 = vld [vmem:[%s3176_s29 + $0x1] ss:$4 sm:$0x3]  ;;  %v3219_v35 = vld [vmem:[%s4252_s1 + $0x8] sm:$0xff]  ;;  %s3329_s30 = sld [smem:[#allocation2 + $0x380]] }
  0x99   : > { %2362 = vmatprep.subr.mxu0 %v3068_v10  ;;  %2397 = vmatprep.subr.mxu1 %v3068_v10  ;;  %v3226_v36 = vld [vmem:[%s4252_s1 + $0x80] sm:$0xff]  ;;  %v567_v39 = vrot.slane %v2222_v34, %v3193_v29  ;;  %v563_v40 = vrot.slane %v2222_v34, %v3211_v33  ;;  %s3331_s25 = sld [smem:[#allocation2 + $0x1]] }
  0x9a   : > { %2363 = vmatpush3.msra.mxu0 %v3075_v11  ;;  %2398 = vmatpush3.msra.mxu1 %v3075_v11  ;;  %v3234_v38 = vld [vmem:[%s4252_s1] sm:$0xff]  ;;  %s3333_s12 = sld [smem:[#allocation2 + $0x81]] }
  0x9b   : > { %2364 = vmatprep.subr.mxu0 %v3082_v12  ;;  %2399 = vmatprep.subr.mxu1 %v3082_v12  ;;  %v2223_v42 = vld [vmem:[%s3176_s29 + $0x2] ss:$4 sm:$0x3]  ;;  %v2224_v43 = vld [vmem:[%s3176_s29 + $0x3] ss:$4 sm:$0x3] }
  0x9c   : > { %2365 = vmatpush3.msra.mxu0 %v3089_v13  ;;  %2400 = vmatpush3.msra.mxu1 %v3089_v13  ;;  %v650_v44 = vrot.slane %v2223_v42, %v3193_v29  ;;  %v733_v45 = vrot.slane %v2224_v43, %v3193_v29  ;;  %v646_v46 = vrot.slane %v2223_v42, %v3211_v33  ;;  %4260 = sst [smem:[#allocation34_spill]] %s3325_s11  ;;  %v922_v58 = vstv %s3325_s11 }
  0x9d   : > { %2366 = vmatprep.subr.mxu0 %v3097_v14  ;;  %2401 = vmatprep.subr.mxu1 %v3097_v14  ;;  %v729_v47 = vrot.slane %v2224_v43, %v3211_v33  ;;  %4261 = sst [smem:[#allocation35_spill]] %s3327_s5  ;;  %v945_v59 = vstv %s3327_s5 }
  0x9e   : > { %2367 = vmatpush3.msra.mxu0 %v3104_v15  ;;  %2402 = vmatpush3.msra.mxu1 %v3104_v15  ;;  %4262 = sst [smem:[#allocation36_spill]] %s3329_s30  ;;  %v968_v60 = vstv %s3329_s30 }
  0x9f   : > { %2368 = vmatprep.subr.mxu0 %v3111_v16  ;;  %2403 = vmatprep.subr.mxu1 %v3111_v16  ;;  %4263 = sst [smem:[#allocation37_spill]] %s3331_s25  ;;  %v810_v61 = vstv %s3331_s25 }
  0xa0   : > { %2369 = vmatpush3.msra.mxu0 %v3118_v17  ;;  %2404 = vmatpush3.msra.mxu1 %v3118_v17  ;;  %4264 = sst [smem:[#allocation38_spill]] %s3333_s12  ;;  %v833_v62 = vstv %s3333_s12 }
  0xa1   : > { %2370 = vmatprep.subr.mxu0 %v3126_v18  ;;  %2405 = vmatprep.subr.mxu1 %v3126_v18  ;;  %s3335_s21 = sld [smem:[#allocation2 + $0x101]] }
  0xa2   : > { %2371 = vmatpush3.msra.mxu0 %v3133_v20  ;;  %2406 = vmatpush3.msra.mxu1 %v3133_v20  ;;  %s3337_s18 = sld [smem:[#allocation2 + $0x181]] }
  0xa3   : > { %2372 = vmatprep.subr.mxu0 %v3140_v21  ;;  %2407 = vmatprep.subr.mxu1 %v3140_v21  ;;  %s3339_s0 = sld [smem:[#allocation2 + $0x201]] }
  0xa4   : > { %2373 = vmatpush3.msra.mxu0 %v3147_v22  ;;  %2408 = vmatpush3.msra.mxu1 %v3147_v22  ;;  %s3341_s1 = sld [smem:[#allocation2 + $0x281]] }
  0xa5   : > { %2374 = vmatprep.subr.mxu0 %v3154_v23  ;;  %2409 = vmatprep.subr.mxu1 %v3154_v23  ;;  %s3343_s4 = sld [smem:[#allocation2 + $0x301]] }
  0xa6   : > { %2375 = vmatpush3.msra.mxu0 %v3164_v25  ;;  %2410 = vmatpush3.msra.mxu1 %v3164_v25  ;;  %s3345_s6 = sld [smem:[#allocation2 + $0x381]] }
  0xa7   : > { %2376 = vmatprep.subr.mxu0 %v3171_v26  ;;  %2411 = vmatprep.subr.mxu1 %v3171_v26  ;;  %4265 = sst [smem:[#allocation39_spill]] %s3335_s21  ;;  %v856_v63 = vstv %s3335_s21 }
  0xa8   : > { %2377 = vmatpush3.msra.mxu0 %v3183_v27  ;;  %2412 = vmatpush3.msra.mxu1 %v3183_v27  ;;  %4266 = sst [smem:[#allocation40_spill]] %s3337_s18 }
  0xa9   : > { %2378 = vmatprep.subr.mxu0 %v3190_v28  ;;  %2413 = vmatprep.subr.mxu1 %v3190_v28  ;;  %4267 = sst [smem:[#allocation41_spill]] %s3339_s0 }
  0xaa   : > { %2379 = vmatpush3.msra.mxu0 %v3200_v30  ;;  %2414 = vmatpush3.msra.mxu1 %v3200_v30  ;;  %4268 = sst [smem:[#allocation42_spill]] %s3341_s1 }
  0xab   : > { %2380 = vmatprep.subr.mxu0 %v3208_v32  ;;  %2415 = vmatprep.subr.mxu1 %v3208_v32  ;;  %4269 = sst [smem:[#allocation43_spill]] %s3343_s4 }
  0xac   : > { %2381 = vmatpush3.msra.mxu0 %v3219_v35  ;;  %2416 = vmatpush3.msra.mxu1 %v3219_v35  ;;  %4270 = sst [smem:[#allocation44_spill]] %s3345_s6 }
  0xad   : > { %2382 = vmatprep.subr.mxu0 %v3226_v36  ;;  %2417 = vmatprep.subr.mxu1 %v3226_v36  ;;  %s3347_s7 = sld [smem:[#allocation2 + $0x2]] }
  0xae   : > { %2383 = vmatpush3.msra.mxu0 %v3234_v38  ;;  %551 = vmatprep.mubr.f32.mxu0 %v484_v37  ;;  %s3349_s8 = sld [smem:[#allocation2 + $0x82]] }
  0xaf   : > { %2418 = vmatpush3.msra.mxu1 %v3234_v38  ;;  %634 = vmatprep.mubr.f32.mxu1 %v567_v39  ;;  %s3351_s9 = sld [smem:[#allocation2 + $0x102]] }
  0xb0   : > { %552 = vmatmul.mubr.f32.vlgmr.msra.gmra.mxu0 %v480_v41  ;;  %635 = vmatmul.mubr.f32.vlgmr.msra.gmra.mxu1 %v563_v40  ;;  %s3353_s15 = sld [smem:[#allocation2 + $0x182]] }
  0xb1   : > { %2422 = vmatprep.subr.mxu0 %v3002_v0  ;;  %2457 = vmatprep.subr.mxu1 %v3002_v0  ;;  %s3355_s19 = sld [smem:[#allocation2 + $0x202]]  ;;  %v879_v0 = vstv %s3337_s18 }
  0xb2   : > { %2423 = vmatpush3.msra.mxu0 %v3007_v1  ;;  %2458 = vmatpush3.msra.mxu1 %v3007_v1  ;;  %s3357_s24 = sld [smem:[#allocation2 + $0x282]]  ;;  %v902_v1 = vstv %s3339_s0 }
  0xb3   : > { %2424 = vmatprep.subr.mxu0 %v3012_v2  ;;  %2459 = vmatprep.subr.mxu1 %v3012_v2  ;;  %4271 = sst [smem:[#allocation45_spill]] %s3347_s7  ;;  %v925_v2 = vstv %s3341_s1 }
  0xb4   : > { %2425 = vmatpush3.msra.mxu0 %v3019_v3  ;;  %2460 = vmatpush3.msra.mxu1 %v3019_v3  ;;  %4272 = sst [smem:[#allocation46_spill]] %s3349_s8  ;;  %v948_v3 = vstv %s3343_s4 }
  0xb5   : > { %2426 = vmatprep.subr.mxu0 %v3026_v4  ;;  %2461 = vmatprep.subr.mxu1 %v3026_v4  ;;  %4273 = sst [smem:[#allocation47_spill]] %s3351_s9  ;;  %v971_v4 = vstv %s3345_s6 }
  0xb6   : > { %2427 = vmatpush3.msra.mxu0 %v3033_v5  ;;  %2462 = vmatpush3.msra.mxu1 %v3033_v5  ;;  %4274 = sst [smem:[#allocation48_spill]] %s3353_s15  ;;  %v814_v5 = vstv %s3347_s7 }
  0xb7   : > { %2428 = vmatprep.subr.mxu0 %v3040_v6  ;;  %2463 = vmatprep.subr.mxu1 %v3040_v6  ;;  %4275 = sst [smem:[#allocation49_spill]] %s3355_s19  ;;  %v837_v6 = vstv %s3349_s8 }
  0xb8   : > { %2429 = vmatpush3.msra.mxu0 %v3047_v7  ;;  %2464 = vmatpush3.msra.mxu1 %v3047_v7  ;;  %4276 = sst [smem:[#allocation50_spill]] %s3357_s24  ;;  %v860_v7 = vstv %s3351_s9 }
  0xb9   : > { %2430 = vmatprep.subr.mxu0 %v3054_v8  ;;  %2465 = vmatprep.subr.mxu1 %v3054_v8  ;;  %s3359_s13 = sld [smem:[#allocation2 + $0x302]] }
  0xba   : > { %2431 = vmatpush3.msra.mxu0 %v3061_v9  ;;  %2466 = vmatpush3.msra.mxu1 %v3061_v9  ;;  %s3361_s16 = sld [smem:[#allocation2 + $0x382]] }
  0xbb   : > { %2432 = vmatprep.subr.mxu0 %v3068_v10  ;;  %2467 = vmatprep.subr.mxu1 %v3068_v10  ;;  %s3363_s10 = sld [smem:[#allocation2 + $0x3]] }
  0xbc   : > { %2433 = vmatpush3.msra.mxu0 %v3075_v11  ;;  %2468 = vmatpush3.msra.mxu1 %v3075_v11  ;;  %s3365_s23 = sld [smem:[#allocation5]] }
  0xbd   : > { %2434 = vmatprep.subr.mxu0 %v3082_v12  ;;  %2469 = vmatprep.subr.mxu1 %v3082_v12  ;;  %s3367_s17 = sld [smem:[#allocation2 + $0x83]] }
  0xbe   : > { %2435 = vmatpush3.msra.mxu0 %v3089_v13  ;;  %2470 = vmatpush3.msra.mxu1 %v3089_v13  ;;  %s3369_s29 = sld [smem:[#allocation5 + $0x1]] }
  0xbf   : > { %2436 = vmatprep.subr.mxu0 %v3097_v14  ;;  %2471 = vmatprep.subr.mxu1 %v3097_v14  ;;  %4277 = sst [smem:[#allocation51_spill]] %s3359_s13 }
  0xc0   : > { %2437 = vmatpush3.msra.mxu0 %v3104_v15  ;;  %2472 = vmatpush3.msra.mxu1 %v3104_v15  ;;  %4278 = sst [smem:[#allocation52_spill]] %s3361_s16 }
  0xc1   : > { %2438 = vmatprep.subr.mxu0 %v3111_v16  ;;  %2473 = vmatprep.subr.mxu1 %v3111_v16  ;;  %4279 = sst [smem:[#allocation53_spill]] %s3363_s10 }
  0xc2   : > { %2439 = vmatpush3.msra.mxu0 %v3118_v17  ;;  %2474 = vmatpush3.msra.mxu1 %v3118_v17  ;;  %4280 = sst [smem:[#allocation54_spill]] %s3365_s23 }
  0xc3   : > { %2440 = vmatprep.subr.mxu0 %v3126_v18  ;;  %2475 = vmatprep.subr.mxu1 %v3126_v18  ;;  %4281 = sst [smem:[#allocation55_spill]] %s3367_s17 }
  0xc4   : > { %2441 = vmatpush3.msra.mxu0 %v3133_v20  ;;  %2476 = vmatpush3.msra.mxu1 %v3133_v20  ;;  %4282 = sst [smem:[#allocation56_spill]] %s3369_s29 }
  0xc5   : > { %2442 = vmatprep.subr.mxu0 %v3140_v21  ;;  %2477 = vmatprep.subr.mxu1 %v3140_v21  ;;  %s3371_s14 = sld [smem:[#allocation2 + $0x103]] }
  0xc6   : > { %2443 = vmatpush3.msra.mxu0 %v3147_v22  ;;  %2478 = vmatpush3.msra.mxu1 %v3147_v22  ;;  %s3373_s3 = sld [smem:[#allocation5 + $0x2]] }
  0xc7   : > { %2444 = vmatprep.subr.mxu0 %v3154_v23  ;;  %2479 = vmatprep.subr.mxu1 %v3154_v23  ;;  %s3375_s15 = sld [smem:[#allocation2 + $0x183]] }
  0xc8   : > { %2445 = vmatpush3.msra.mxu0 %v3164_v25  ;;  %2480 = vmatpush3.msra.mxu1 %v3164_v25  ;;  %s3377_s19 = sld [smem:[#allocation5 + $0x3]] }
  0xc9   : > { %2446 = vmatprep.subr.mxu0 %v3171_v26  ;;  %2481 = vmatprep.subr.mxu1 %v3171_v26  ;;  %s3379_s24 = sld [smem:[#allocation2 + $0x203]] }
  0xca   : > { %2447 = vmatpush3.msra.mxu0 %v3183_v27  ;;  %2482 = vmatpush3.msra.mxu1 %v3183_v27  ;;  %s3381_s13 = sld [smem:[#allocation5 + $0x4]] }
  0xcb   : > { %2448 = vmatprep.subr.mxu0 %v3190_v28  ;;  %2483 = vmatprep.subr.mxu1 %v3190_v28  ;;  %4283 = sst [smem:[#allocation57_spill]] %s3371_s14 }
  0xcc   : > { %2449 = vmatpush3.msra.mxu0 %v3200_v30  ;;  %2484 = vmatpush3.msra.mxu1 %v3200_v30  ;;  %4284 = sst [smem:[#allocation58_spill]] %s3373_s3 }
  0xcd   : > { %2450 = vmatprep.subr.mxu0 %v3208_v32  ;;  %2485 = vmatprep.subr.mxu1 %v3208_v32  ;;  %4285 = sst [smem:[#allocation59_spill]] %s3375_s15 }
  0xce   : > { %2451 = vmatpush3.msra.mxu0 %v3219_v35  ;;  %2486 = vmatpush3.msra.mxu1 %v3219_v35  ;;  %4286 = sst [smem:[#allocation60_spill]] %s3377_s19 }
  0xcf   : > { %2452 = vmatprep.subr.mxu0 %v3226_v36  ;;  %2487 = vmatprep.subr.mxu1 %v3226_v36  ;;  %4287 = sst [smem:[#allocation61_spill]] %s3379_s24 }
  0xd0   : > { %2453 = vmatpush3.msra.mxu0 %v3234_v38  ;;  %717 = vmatprep.mubr.f32.mxu0 %v650_v44  ;;  %4288 = sst [smem:[#allocation62_spill]] %s3381_s13 }
  0xd1   : > { %2488 = vmatpush3.msra.mxu1 %v3234_v38  ;;  %800 = vmatprep.mubr.f32.mxu1 %v733_v45  ;;  %s3383_s16 = sld [smem:[#allocation2 + $0x283]] }
  0xd2   : > { %718 = vmatmul.mubr.f32.vlgmr.msra.gmra.mxu0 %v646_v46  ;;  %801 = vmatmul.mubr.f32.vlgmr.msra.gmra.mxu1 %v729_v47  ;;  %s3385_s10 = sld [smem:[#allocation5 + $0x5]] }
  0xd3   : > { %s3387_s23 = sld [smem:[#allocation2 + $0x303]]  ;;  %1231 = vmatprep.mubr.f32.mxu1 %v4195_v52  ;;  %1138 = vmatprep.mubr.f32.mxu0 %v4195_v52 }
  0xd4   : > { %s3389_s17 = sld [smem:[#allocation5 + $0x6]] }
  0xd5   : > { %s3391_s29 = sld [smem:[#allocation2 + $0x383]] }
  0xd6   : > { %s3393_s14 = sld [smem:[#allocation5 + $0x7]] }
  0xd7   : > { %4289 = sst [smem:[#allocation63_spill]] %s3383_s16 }
  0xd8   : > { %4290 = sst [smem:[#allocation64_spill]] %s3385_s10 }
  0xd9   : > { %4291 = sst [smem:[#allocation65_spill]] %s3387_s23 }
  0xda   : > { %4292 = sst [smem:[#allocation66_spill]] %s3389_s17 }
  0xdb   : > { %4293 = sst [smem:[#allocation67_spill]] %s3391_s29 }
  0xdc   : > { %4294 = sst [smem:[#allocation68_spill]] %s3393_s14 }
  0xdd   : > { %s3395_s3 = sld [smem:[#allocation7]] }
  0xde   : > { %s3397_s15 = sld [smem:[#allocation7 + $0x1]] }
  0xdf   : > { %s3399_s19 = sld [smem:[#allocation7 + $0x2]] }
  0xe0   : > { %s3401_s24 = sld [smem:[#allocation7 + $0x3]] }
  0xe1   : > { %s3403_s13 = sld [smem:[#allocation7 + $0x4]] }
  0xe2   : > { %s3405_s16 = sld [smem:[#allocation7 + $0x5]] }
  0xe3   : > { %4295 = sst [smem:[#allocation69_spill]] %s3395_s3 }
  0xe4   : > { %4296 = sst [smem:[#allocation70_spill]] %s3397_s15 }
  0xe5   : > { %4297 = sst [smem:[#allocation71_spill]] %s3399_s19 }
  0xe6   : > { %4298 = sst [smem:[#allocation72_spill]] %s3401_s24 }
  0xe7   : > { %4299 = sst [smem:[#allocation73_spill]] %s3403_s13 }
  0xe8   : > { %4300 = sst [smem:[#allocation74_spill]] %s3405_s16 }
  0xe9   : > { %s4301_s2 = sld [smem:[#allocation118_spill]] }
  0xea   : > { %s3422_s24 = sld [smem:[#allocation7 + $0x6]] }
  0xeb   : > { %s3431_s10 = sld [smem:[#allocation7 + $0x7]] }
  0xec   : > { %s3435_s3 = sld [smem:[#allocation7 + $0x80]] }
  0xed   : > { %s3438_s15 = sld [smem:[#allocation7 + $0x81]] }
  0xee   : > { %s3441_s13 = sld [smem:[#allocation7 + $0x82]] }
  0xef   : > { %v3410_v48 = vld [vmem:[%s4301_s2 + $0x18] sm:$0xff]  ;;  %v3415_v49 = vld [vmem:[%s4301_s2 + $0x10] sm:$0xff]  ;;  %v3420_v50 = vld [vmem:[%s4301_s2 + $0x8] sm:$0xff]  ;;  %s3444_s16 = sld [smem:[#allocation7 + $0x83]] }
  0xf0   : > { %4302 = sst [smem:[#allocation75_spill]] %s3422_s24  ;;  %1195 = vmatprep.subr.mxu1 %v3410_v48  ;;  %v3428_v51 = vld [vmem:[%s4301_s2] sm:$0xff] }
  0xf1   : > { %4303 = sst [smem:[#allocation76_spill]] %s3431_s10  ;;  %1196 = vmatpush1.msra.mxu1 %v3415_v49 }
  0xf2   : > { %4304 = sst [smem:[#allocation77_spill]] %s3435_s3  ;;  %1197 = vmatprep.subr.mxu1 %v3420_v50 }
  0xf3   : > { %4305 = sst [smem:[#allocation78_spill]] %s3438_s15  ;;  %1198 = vmatpush1.msra.mxu1 %v3428_v51 }
  0xf4   : > { %4306 = sst [smem:[#allocation79_spill]] %s3441_s13  ;;  %1467 = vmatprep.subr.mxu1 %v3410_v48 }
  0xf5   : > { %4307 = sst [smem:[#allocation80_spill]] %s3444_s16 }
  0xf6   : > { %s3446_s17 = sld [smem:[#allocation7 + $0x84]] }
  0xf7   : > { %s3448_s23 = sld [smem:[#allocation7 + $0x85]] }
  0xf8   : > { %s3450_s29 = sld [smem:[#allocation8]] }
  0xf9   : > { %s3452_s2 = sld [smem:[#allocation7 + $0x86]] }
  0xfa   : > { %s3454_s3 = sld [smem:[#allocation7 + $0x87]] }
  0xfb   : > { %s3456_s10 = sld [smem:[#allocation8 + $0x1]] }
  0xfc   : > { %4308 = sst [smem:[#allocation81_spill]] %s3446_s17 }
  0xfd   : > { %4309 = sst [smem:[#allocation82_spill]] %s3448_s23 }
  0xfe   : > { %4310 = sst [smem:[#allocation83_spill]] %s3450_s29 }
  0xff   : > { %4311 = sst [smem:[#allocation84_spill]] %s3452_s2 }
 0x100   : > { %4312 = sst [smem:[#allocation85_spill]] %s3454_s3 }
 0x101   : > { %4313 = sst [smem:[#allocation86_spill]] %s3456_s10 }
 0x102   : > { %s3458_s15 = sld [smem:[#allocation7 + $0x100]] }
 0x103   : > { %s3460_s13 = sld [smem:[#allocation7 + $0x101]] }
 0x104   : > { %s3462_s24 = sld [smem:[#allocation7 + $0x102]] }
 0x105   : > { %s3464_s16 = sld [smem:[#allocation7 + $0x103]] }
 0x106   : > { %s3466_s23 = sld [smem:[#allocation7 + $0x104]] }
 0x107   : > { %s3468_s29 = sld [smem:[#allocation7 + $0x105]] }
 0x108   : > { %4314 = sst [smem:[#allocation87_spill]] %s3458_s15 }
 0x109   : > { %4315 = sst [smem:[#allocation88_spill]] %s3460_s13 }
 0x10a   : > { %4316 = sst [smem:[#allocation89_spill]] %s3462_s24 }
 0x10b   : > { %4317 = sst [smem:[#allocation90_spill]] %s3464_s16 }
 0x10c   : > { %4318 = sst [smem:[#allocation91_spill]] %s3466_s23 }
 0x10d   : > { %4319 = sst [smem:[#allocation92_spill]] %s3468_s29 }
 0x10e   : > { %s3470_s3 = sld [smem:[#allocation7 + $0x106]] }
 0x10f   : > { %s3472_s10 = sld [smem:[#allocation7 + $0x107]] }
 0x110   : > { %s3474_s15 = sld [smem:[#allocation8 + $0x2]] }
 0x111   : > { %s3476_s13 = sld [smem:[#allocation7 + $0x180]] }
 0x112   : > { %s3478_s24 = sld [smem:[#allocation7 + $0x181]] }
 0x113   : > { %s3480_s16 = sld [smem:[#allocation7 + $0x182]] }
 0x114   : > { %4320 = sst [smem:[#allocation93_spill]] %s3470_s3 }
 0x115   : > { %4321 = sst [smem:[#allocation94_spill]] %s3472_s10 }
 0x116   : > { %4322 = sst [smem:[#allocation95_spill]] %s3474_s15 }
 0x117   : > { %4323 = sst [smem:[#allocation96_spill]] %s3476_s13 }
 0x118   : > { %4324 = sst [smem:[#allocation97_spill]] %s3478_s24 }
 0x119   : > { %4325 = sst [smem:[#allocation98_spill]] %s3480_s16 }
 0x11a   : > { %s3482_s23 = sld [smem:[#allocation7 + $0x183]] }
 0x11b   : > { %s3484_s29 = sld [smem:[#allocation7 + $0x184]] }
 0x11c   : > { %s3486_s3 = sld [smem:[#allocation7 + $0x185]] }
 0x11d   : > { %s3488_s10 = sld [smem:[#allocation7 + $0x186]] }
 0x11e   : > { %s3491_s13 = sld [smem:[#allocation7 + $0x187]] }
 0x11f   : > { %s3503_s20 = sld [smem:[#allocation10 + $0x100]] }
 0x120   : > { %4326 = sst [smem:[#allocation99_spill]] %s3482_s23 }
 0x121   : > { %4327 = sst [smem:[#allocation100_spill]] %s3484_s29 }
 0x122   : > { %4328 = sst [smem:[#allocation101_spill]] %s3486_s3 }
 0x123   : > { %4329 = sst [smem:[#allocation102_spill]] %s3488_s10 }
 0x124   : > { %4330 = sst [smem:[#allocation103_spill]] %s3491_s13 }
 0x125   : > { %s3497_s23 = sld [smem:[#allocation8 + $0x3]] }
 0x126   : > { %s4332_s3 = sld [smem:[#allocation48_spill]] }
 0x127   : > { %s4333_s10 = sld [smem:[#allocation49_spill]] }
 0x128   : > { %4334 = sst [smem:[#allocation105_spill]] %s3503_s20 }
 0x129   : > { %s4335_s13 = sld [smem:[#allocation50_spill]] }
 0x12a   : > { %s3509_s26 = sld [smem:[#allocation10 + $0x101]] }
 0x12b   : > { %4331 = sst [smem:[#allocation104_spill]] %s3497_s23 }
 0x12c   : > { %s4337_s27 = sld [smem:[#allocation51_spill]]  ;;  %v883_v8 = vstv %s4332_s3 }
 0x12d   : > { %s4338_s22 = sld [smem:[#allocation52_spill]]  ;;  %v906_v9 = vstv %s4333_s10 }
 0x12e   : > { %s4339_s11 = sld [smem:[#allocation53_spill]] }
 0x12f   : > { %s3515_s5 = sld [smem:[#allocation10 + $0x102]]  ;;  %v929_v10 = vstv %s4335_s13 }
 0x130   : > { %4336 = sst [smem:[#allocation106_spill]] %s3509_s26 }
 0x131   : > { %s4341_s30 = sld [smem:[#allocation54_spill]] }
 0x132   : > { %s4342_s25 = sld [smem:[#allocation55_spill]]  ;;  %v952_v14 = vstv %s4337_s27 }
 0x133   : > { %s4343_s12 = sld [smem:[#allocation56_spill]]  ;;  %v975_v15 = vstv %s4338_s22 }
 0x134   : > { %s4344_s18 = sld [smem:[#allocation57_spill]]  ;;  %v818_v16 = vstv %s4339_s11 }
 0x135   : > { %4340 = sst [smem:[#allocation107_spill]] %s3515_s5 }
 0x136   : > { %s3521_s0 = sld [smem:[#allocation10 + $0x103]] }
 0x137   : > { %s3524_s21 = sld [smem:[#allocation10 + $0x104]]  ;;  %v822_v18 = vstv %s4341_s30 }
 0x138   : > { %s4347_s28 = sld [smem:[#allocation119_spill]]  ;;  %v841_v20 = vstv %s4342_s25 }
 0x139   : > { %s4348_s6 = sld [smem:[#allocation58_spill]]  ;;  %v845_v21 = vstv %s4343_s12 }
 0x13a   : > { %s4349_s9 = sld [smem:[#allocation59_spill]]  ;;  %v864_v22 = vstv %s4344_s18 }
 0x13b   : > { %s4350_s5 = sld [smem:[#allocation60_spill]] }
 0x13c   : > { %4345 = sst [smem:[#allocation108_spill]] %s3521_s0 }
 0x13d   : > { %4346 = sst [smem:[#allocation109_spill]] %s3524_s21 }
 0x13e   : > { %v3529_v11 = vld [vmem:[%s4347_s28 + $0x18] sm:$0xff]  ;;  %v3534_v12 = vld [vmem:[%s4347_s28 + $0x10] sm:$0xff]  ;;  %v3539_v13 = vld [vmem:[%s4347_s28 + $0x8] sm:$0xff]  ;;  %s4351_s13 = sld [smem:[#allocation61_spill]] }
 0x13f   : > { %s4352_s1 = sld [smem:[#allocation62_spill]]  ;;  %1102 = vmatprep.subr.mxu0 %v3529_v11  ;;  %v3550_v17 = vld [vmem:[%s4347_s28] sm:$0xff]  ;;  %v868_v23 = vstv %s4348_s6 }
 0x140   : > { %s3544_s4 = sld [smem:[#allocation10 + $0x105]]  ;;  %1103 = vmatpush1.msra.mxu0 %v3534_v12  ;;  %v887_v25 = vstv %s4349_s9 }
 0x141   : > { %s4354_s21 = sld [smem:[#allocation63_spill]]  ;;  %v891_v26 = vstv %s4350_s5  ;;  %1104 = vmatprep.subr.mxu0 %v3539_v13 }
 0x142   : > { %s4355_s0 = sld [smem:[#allocation64_spill]]  ;;  %1105 = vmatpush1.msra.mxu0 %v3550_v17 }
 0x143   : > { %s4356_s10 = sld [smem:[#allocation65_spill]]  ;;  %1373 = vmatprep.subr.mxu0 %v3529_v11 }
 0x144   : > { %s4357_s3 = sld [smem:[#allocation66_spill]]  ;;  %v910_v27 = vstv %s4351_s13 }
 0x145   : > { %s4358_s22 = sld [smem:[#allocation67_spill]]  ;;  %v914_v28 = vstv %s4352_s1 }
 0x146   : > { %4353 = sst [smem:[#allocation110_spill]] %s3544_s4 }
 0x147   : > { %s3556_s11 = sld [smem:[#allocation10 + $0x106]]  ;;  %v933_v29 = vstv %s4354_s21 }
 0x148   : > { %s3563_s8 = sld [smem:[#allocation10 + $0x107]]  ;;  %v937_v30 = vstv %s4355_s0 }
 0x149   : > { %v956_v31 = vstv %s4356_s10  ;;  %s4368_s5 = sld [smem:[#allocation77_spill]] }
 0x14a   : > { %v960_v32 = vstv %s4357_s3  ;;  %s3584_s10 = sld [smem:[#allocation10 + $0x1]] }
 0x14b   : > { %v979_v33 = vstv %s4358_s22  ;;  %s3590_s21 = sld [smem:[#allocation10 + $0x2]] }
 0x14c   : > { %s3602_s30 = sld [smem:[#allocation10 + $0x4]] }
 0x14d   : > { %4359 = sst [smem:[#allocation111_spill]] %s3556_s11 }
 0x14e   : > { %4362 = sst [smem:[#allocation112_spill]] %s3563_s8 }
 0x14f   : > { %s3570_s11 = sld [smem:[#allocation11 + $0x2]] }
 0x150   : > { %s3577_s8 = sld [smem:[#allocation10]] }
 0x151   : > { %4375 = sst [smem:[#allocation113_spill]] %s3584_s10 }
 0x152   : > { %s3596_s10 = sld [smem:[#allocation10 + $0x3]] }
 0x153   : > { %s3608_s17 = sld [smem:[#allocation10 + $0x5]] }
 0x154   : > { %s3614_s3 = sld [smem:[#allocation10 + $0x6]] }
 0x155   : > { %s3620_s1 = sld [smem:[#allocation10 + $0x7]] }
 0x156   : > { %4372 = sst [smem:[#allocation77_spill]] %s3577_s8 }
 0x157   : > { %s3626_s12 = sld [smem:[#allocation11]] }
 0x158   : > { %s4397_s19 = sld [smem:[#allocation112_spill]] }
 0x159   : > { %s4398_s15 = sld [smem:[#allocation77_spill]] }
 0x15a   : > { %s4399_s25 = sld [smem:[#allocation113_spill]] }
 0x15b   : > { %4393 = sst [smem:[#allocation114_spill]] %s3620_s1 }
 0x15c   : > { %s3632_s24 = sld [smem:[#allocation10 + $0x180]] }
 0x15d   : > { %4396 = sst [smem:[#allocation115_spill]] %s3626_s12 }
 0x15e   : > { %s3637_s9 = sld [smem:[#allocation10 + $0x181]] }
 0x15f   : > { %s3642_s18 = sld [smem:[#allocation10 + $0x182]] }
 0x160   : > { %s4439_s26 = sld [smem:[#allocation68_spill]] }
 0x161   : > { %s3730_s27 = sld [smem:[#allocation10 + $0x183]] }
 0x162   : > { %s3740_s13 = sld [smem:[#allocation10 + $0x184]] }
 0x163   : > { %s3742_s16 = sld [smem:[#allocation10 + $0x185]] }
 0x164   : > { %s3744_s23 = sld [smem:[#allocation10 + $0x80]] }
 0x165   : > { %s3746_s29 = sld [smem:[#allocation10 + $0x81]] }
 0x166   : > { %s3748_s4 = sld [smem:[#allocation10 + $0x82]] }
 0x167   : > { %4440 = sst [smem:[#allocation112_spill]] %s3730_s27 }
 0x168   : > { %4442 = sst [smem:[#allocation77_spill]] %s3740_s13 }
 0x169   : > { %4443 = sst [smem:[#allocation113_spill]] %s3742_s16 }
 0x16a   : > { %s4444_s7 = sld [smem:[#allocation69_spill]] }
 0x16b   : > { %s4445_s8 = sld [smem:[#allocation70_spill]] }
 0x16c   : > { %s4446_s0 = sld [smem:[#allocation71_spill]] }
 0x16d   : > { %s4447_s2 = sld [smem:[#allocation72_spill]] }
 0x16e   : > { %s4448_s14 = sld [smem:[#allocation73_spill]] }
 0x16f   : > { %s4449_s6 = sld [smem:[#allocation74_spill]] }
 0x170   : > { %v2384_v44 = vpop.f32.mrf.mxu0  ;;  %v2419_v52 = vpop.f32.mrf.mxu1  ;;  %s4450_s20 = sld [smem:[#allocation75_spill]] }
 0x171   : > { %s4451_s28 = sld [smem:[#allocation78_spill]] }
 0x172   : > { %v2385_v45 = vpop.f32.mrf.mxu0  ;;  %v2420_v41 = vpop.f32.mrf.mxu1  ;;  %s4453_s22 = sld [smem:[#allocation76_spill]] }
 0x173   : > { %v2386_v43 = vadd.f32 %v2385_v45, %v2384_v44  ;;  %v2421_v46 = vadd.f32 %v2420_v41, %v2419_v52  ;;  %s4456_s12 = sld [smem:[#allocation80_spill]] }
 0x174   : > { %s4457_s1 = sld [smem:[#allocation81_spill]] }
 0x175   : > { %v808_v19 = vmul.f32 %v2386_v43, %v807_v53  ;;  %v831_v47 = vmul.f32 %v2386_v43, %v830_v54  ;;  %v854_v44 = vmul.f32 %v2386_v43, %v853_v55  ;;  %v877_v45 = vmul.f32 %v2386_v43, %v876_v56 }
 0x176   : > { %v900_v40 = vmul.f32 %v2386_v43, %v899_v57  ;;  %v923_v52 = vmul.f32 %v2386_v43, %v922_v58  ;;  %v811_v41 = vmul.f32 %v2421_v46, %v810_v61  ;;  %v834_v39 = vmul.f32 %v2421_v46, %v833_v62 }
 0x177   : > { %v946_v53 = vmul.f32 %v2386_v43, %v945_v59  ;;  %v857_v54 = vmul.f32 %v2421_v46, %v856_v63  ;;  %v880_v55 = vmul.f32 %v2421_v46, %v879_v0  ;;  %v903_v56 = vmul.f32 %v2421_v46, %v902_v1 }
 0x178   : > { %v969_v57 = vmul.f32 %v2386_v43, %v968_v60  ;;  %v926_v42 = vmul.f32 %v2421_v46, %v925_v2  ;;  %v949_v58 = vmul.f32 %v2421_v46, %v948_v3  ;;  %v972_v61 = vmul.f32 %v2421_v46, %v971_v4 }
 0x179   : > { %v812_v0 = vadd.f32 %v811_v41, %v808_v19  ;;  %v835_v1 = vadd.f32 %v834_v39, %v831_v47  ;;  %v1811_v2 = vstv %s3637_s9  ;;  %v1819_v3 = vstv %s3642_s18  ;;  %s3935_s9 = sld [smem:[#allocation10 + $0x85]] }
 0x17a   : > { %v858_v4 = vadd.f32 %v857_v54, %v854_v44  ;;  %v881_v43 = vadd.f32 %v880_v55, %v877_v45  ;;  %v904_v46 = vadd.f32 %v903_v56, %v900_v40  ;;  %v927_v36 = vadd.f32 %v926_v42, %v923_v52  ;;  %s3946_s18 = sld [smem:[#allocation10 + $0x86]] }
 0x17b   : > { %v950_v37 = vadd.f32 %v949_v58, %v946_v53  ;;  %v973_v63 = vadd.f32 %v972_v61, %v969_v57 }
 0x192   : > { %v2454_v38 = vpop.f32.mrf.mxu0  ;;  %v2489_v62 = vpop.f32.mrf.mxu1 }
 0x194   : > { %v2455_v35 = vpop.f32.mrf.mxu0  ;;  %v2490_v60 = vpop.f32.mrf.mxu1 }
 0x195   : > { %v2456_v59 = vadd.f32 %v2455_v35, %v2454_v38  ;;  %v2491_v34 = vadd.f32 %v2490_v60, %v2489_v62 }
 0x197   : > { %v815_v19 = vmul.f32 %v2456_v59, %v814_v5  ;;  %v838_v39 = vmul.f32 %v2456_v59, %v837_v6  ;;  %v861_v47 = vmul.f32 %v2456_v59, %v860_v7  ;;  %v884_v41 = vmul.f32 %v2456_v59, %v883_v8 }
 0x198   : > { %v907_v44 = vmul.f32 %v2456_v59, %v906_v9  ;;  %v930_v35 = vmul.f32 %v2456_v59, %v929_v10  ;;  %v953_v38 = vmul.f32 %v2456_v59, %v952_v14  ;;  %v976_v5 = vmul.f32 %v2456_v59, %v975_v15 }
 0x199   : > { %v816_v6 = vadd.f32 %v815_v19, %v812_v0  ;;  %v839_v40 = vadd.f32 %v838_v39, %v835_v1  ;;  %v862_v42 = vadd.f32 %v861_v47, %v858_v4  ;;  %v885_v7 = vadd.f32 %v884_v41, %v881_v43 }
 0x19a   : > { %v908_v45 = vadd.f32 %v907_v44, %v904_v46  ;;  %v931_v52 = vadd.f32 %v930_v35, %v927_v36  ;;  %v954_v8 = vadd.f32 %v953_v38, %v950_v37  ;;  %v977_v53 = vadd.f32 %v976_v5, %v973_v63 }
 0x19b   : > { %v819_v9 = vmul.f32 %v2491_v34, %v818_v16  ;;  %v842_v10 = vmul.f32 %v2491_v34, %v841_v20  ;;  %v865_v14 = vmul.f32 %v2491_v34, %v864_v22  ;;  %v888_v15 = vmul.f32 %v2491_v34, %v887_v25 }
 0x19c   : > { %v911_v54 = vmul.f32 %v2491_v34, %v910_v27  ;;  %v934_v55 = vmul.f32 %v2491_v34, %v933_v29  ;;  %v957_v36 = vmul.f32 %v2491_v34, %v956_v31  ;;  %v980_v16 = vmul.f32 %v2491_v34, %v979_v33 }
 0x19d   : > { %v820_v37 = vadd.f32 %v819_v9, %v816_v6  ;;  %v843_v20 = vadd.f32 %v842_v10, %v839_v40  ;;  %v866_v56 = vadd.f32 %v865_v14, %v862_v42  ;;  %v889_v22 = vadd.f32 %v888_v15, %v885_v7 }
 0x19e   : > { %v912_v57 = vadd.f32 %v911_v54, %v908_v45  ;;  %v935_v58 = vadd.f32 %v934_v55, %v931_v52  ;;  %v958_v25 = vadd.f32 %v957_v36, %v954_v8  ;;  %v981_v61 = vadd.f32 %v980_v16, %v977_v53 }
 0x19f   : > { %v823_v27 = vadd.f32 %v822_v18, %v820_v37  ;;  %v846_v29 = vadd.f32 %v845_v21, %v843_v20  ;;  %v869_v62 = vadd.f32 %v868_v23, %v866_v56  ;;  %v892_v31 = vadd.f32 %v891_v26, %v889_v22 }
 0x1a0   : > { %v915_v33 = vadd.f32 %v914_v28, %v912_v57  ;;  %v938_v34 = vadd.f32 %v937_v30, %v935_v58  ;;  %v961_v59 = vadd.f32 %v960_v32, %v958_v25  ;;  %v4441_v63 = vstv %s4439_s26  ;;  %s4455_s26 = sld [smem:[#allocation79_spill]] }
 0x1a1   : > { %v984_v0 = vadd.f32 %v4441_v63, %v981_v61  ;;  %v824_v1 = vadd.f32 3.0, %v823_v27  ;;  %v847_v18 = vadd.f32 3.0, %v846_v29  ;;  %v870_v60 = vadd.f32 3.0, %v869_v62 }
 0x1a2   : > { %v893_v21 = vadd.f32 3.0, %v892_v31  ;;  %v916_v23 = vadd.f32 3.0, %v915_v33  ;;  %v939_v26 = vadd.f32 3.0, %v938_v34  ;;  %v962_v4 = vadd.f32 3.0, %v961_v59 }
 0x1a3   : > { %v985_v43 = vadd.f32 3.0, %v984_v0  ;;  %v825_v28 = vmax.f32 %v824_v1, 0.0  ;;  %v848_v30 = vmax.f32 %v847_v18, 0.0  ;;  %v871_v46 = vmax.f32 %v870_v60, 0.0 }
 0x1a4   : > { %v894_v32 = vmax.f32 %v893_v21, 0.0  ;;  %v917_v19 = vmax.f32 %v916_v23, 0.0  ;;  %v940_v39 = vmax.f32 %v939_v26, 0.0  ;;  %v963_v47 = vmax.f32 %v962_v4, 0.0 }
 0x1a5   : > { %v986_v41 = vmax.f32 %v985_v43, 0.0  ;;  %v826_v44 = vmin.f32 %v825_v28, 6.0  ;;  %v849_v35 = vmin.f32 %v848_v30, 6.0  ;;  %v872_v38 = vmin.f32 %v871_v46, 6.0 }
 0x1a6   : > { %v895_v5 = vmin.f32 %v894_v32, 6.0  ;;  %v918_v6 = vmin.f32 %v917_v19, 6.0  ;;  %v941_v40 = vmin.f32 %v940_v39, 6.0  ;;  %v964_v42 = vmin.f32 %v963_v47, 6.0 }
 0x1a7   : > { %v987_v7 = vmin.f32 %v986_v41, 6.0  ;;  %v827_v45 = vmul.f32 %v826_v44, %v823_v27  ;;  %v850_v52 = vmul.f32 %v849_v35, %v846_v29  ;;  %v873_v8 = vmul.f32 %v872_v38, %v869_v62 }
 0x1a8   : > { %v896_v53 = vmul.f32 %v895_v5, %v892_v31  ;;  %v919_v9 = vmul.f32 %v918_v6, %v915_v33  ;;  %v942_v10 = vmul.f32 %v941_v40, %v938_v34  ;;  %v965_v14 = vmul.f32 %v964_v42, %v961_v59 }
 0x1a9   : > { %v988_v15 = vmul.f32 %v987_v7, %v984_v0  ;;  %v3750_v54 = vmul.f32 0.16666667, %v827_v45  ;;  %v3752_v55 = vmul.f32 0.16666667, %v850_v52  ;;  %v3754_v36 = vmul.f32 0.16666667, %v873_v8 }
 0x1aa   : > { %v1827_v16 = vstv %s3730_s27  ;;  %v3757_v37 = vmul.f32 0.16666667, %v896_v53  ;;  %v3759_v20 = vmul.f32 0.16666667, %v919_v9  ;;  %v3761_v56 = vmul.f32 0.16666667, %v942_v10 }
 0x1ab   : > { %v1835_v22 = vstv %s3740_s13  ;;  %v3764_v57 = vmul.f32 0.16666667, %v965_v14  ;;  %v3766_v58 = vmul.f32 0.16666667, %v988_v15  ;;  %v4452_v25 = vstv %s4444_s7  ;;  %s4458_s27 = sld [smem:[#allocation87_spill]] }
 0x1ac   : > { %v992_v61 = vmul.f32 %v4452_v25, %v3750_v54  ;;  %v4454_v27 = vstv %s4445_s8  ;;  %v1843_v62 = vstv %s3742_s16  ;;  %v1266_v31 = vstv %s3744_s23  ;;  %s4459_s13 = sld [smem:[#allocation88_spill]] }
 0x1ad   : > { %v998_v29 = vmul.f32 %v4454_v27, %v3752_v55  ;;  %v1273_v33 = vstv %s3746_s29  ;;  %v1281_v34 = vstv %s3748_s4  ;;  %v4460_v63 = vstv %s4446_s0  ;;  %s4462_s7 = sld [smem:[#allocation82_spill]]  ;;  %s2803_s29 = smov 112  }
 0x1ae   : > { %v1006_v0 = vmul.f32 %v4460_v63, %v3754_v36  ;;  %v4461_v1 = vstv %s4447_s2  ;;  %v4463_v60 = vstv %s4368_s5  ;;  %s4464_s8 = sld [smem:[#allocation84_spill]]  ;;  %v4465_v23 = vstv %s4448_s14 }
 0x1af   : > { %v999_v59 = vadd.f32 %v998_v29, %v992_v61  ;;  %v1014_v18 = vmul.f32 %v4461_v1, %v3757_v37  ;;  %v1264_v21 = vmul.f32 %v4463_v60, %v3750_v54  ;;  %s4466_s16 = sld [smem:[#allocation85_spill]]  ;;  %v1022_v26 = vmul.f32 %v4465_v23, %v3759_v20 }
 0x1b0   : > { %v4467_v4 = vstv %s4449_s6  ;;  %v4468_v28 = vstv %s4450_s20  ;;  %v4469_v46 = vstv %s4451_s28  ;;  %s4470_s0 = sld [smem:[#allocation89_spill]]  ;;  %v4472_v39 = vstv %s4453_s22 }
 0x1b1   : > { %v1030_v43 = vmul.f32 %v4467_v4, %v3761_v56  ;;  %v1038_v30 = vmul.f32 %v4468_v28, %v3764_v57  ;;  %v1270_v32 = vmul.f32 %v4469_v46, %v3752_v55  ;;  %s4471_s2 = sld [smem:[#allocation90_spill]]  ;;  %v1007_v19 = vadd.f32 %v1006_v0, %v999_v59 }
 0x1b2   : > { %v1046_v47 = vmul.f32 %v4472_v39, %v3766_v58  ;;  %v4473_v41 = vstv %s4455_s26  ;;  %s4474_s5 = sld [smem:[#allocation91_spill]]  ;;  %v4475_v35 = vstv %s4456_s12  ;;  %v4478_v6 = vstv %s4457_s1 }
 0x1b3   : > { %v1278_v44 = vmul.f32 %v4473_v41, %v3754_v36  ;;  %s4476_s14 = sld [smem:[#allocation96_spill]]  ;;  %v1286_v38 = vmul.f32 %v4475_v35, %v3757_v37  ;;  %v1271_v5 = vadd.f32 %v1270_v32, %v1264_v21  ;;  %v1294_v40 = vmul.f32 %v4478_v6, %v3759_v20 }
 0x1b4   : > { %s4477_s6 = sld [smem:[#allocation97_spill]]  ;;  %v4479_v42 = vstv %s4458_s27  ;;  %v4480_v45 = vstv %s4459_s13  ;;  %v1015_v8 = vadd.f32 %v1014_v18, %v1007_v19  ;;  %v4483_v53 = vstv %s4462_s7 }
 0x1b5   : > { %v1533_v7 = vmul.f32 %v4479_v42, %v3750_v54  ;;  %s4481_s20 = sld [smem:[#allocation92_spill]]  ;;  %v1539_v52 = vmul.f32 %v4480_v45, %v3752_v55  ;;  %v1302_v9 = vmul.f32 %v4483_v53, %v3761_v56  ;;  %v4484_v10 = vstv %s4464_s8 }
 0x1b6   : > { %s4482_s28 = sld [smem:[#allocation93_spill]]  ;;  %v1310_v14 = vmul.f32 %v4484_v10, %v3764_v57  ;;  %v4486_v15 = vstv %s4466_s16  ;;  %v1279_v61 = vadd.f32 %v1278_v44, %v1271_v5  ;;  %v4488_v29 = vstv %s4470_s0 }
 0x1b7   : > { %s4485_s12 = sld [smem:[#allocation94_spill]]  ;;  %v1318_v25 = vmul.f32 %v4486_v15, %v3766_v58  ;;  %v1540_v27 = vadd.f32 %v1539_v52, %v1533_v7  ;;  %v1547_v59 = vmul.f32 %v4488_v29, %v3754_v36  ;;  %v4489_v63 = vstv %s4471_s2 }
 0x1b8   : > { %s4487_s1 = sld [smem:[#allocation98_spill]]  ;;  %v1555_v0 = vmul.f32 %v4489_v63, %v3757_v37  ;;  %v1023_v1 = vadd.f32 %v1022_v26, %v1015_v8  ;;  %v4492_v18 = vstv %s4474_s5  ;;  %v1287_v46 = vadd.f32 %v1286_v38, %v1279_v61 }
 0x1b9   : > { %s4490_s27 = sld [smem:[#allocation99_spill]]  ;;  %v1563_v60 = vmul.f32 %v4492_v18, %v3759_v20  ;;  %v4493_v21 = vstv %s4476_s14  ;;  %v1548_v32 = vadd.f32 %v1547_v59, %v1540_v27 }
 0x1ba   : > { %s4491_s13 = sld [smem:[#allocation105_spill]]  ;;  %v1802_v23 = vmul.f32 %v4493_v21, %v3750_v54  ;;  %v4494_v4 = vstv %s4477_s6  ;;  %v1031_v44 = vadd.f32 %v1030_v43, %v1023_v1  ;;  %v1295_v45 = vadd.f32 %v1294_v40, %v1287_v46 }
 0x1bb   : > { %s4495_s16 = sld [smem:[#allocation100_spill]]  ;;  %v1808_v28 = vmul.f32 %v4494_v4, %v3752_v55  ;;  %v4497_v19 = vstv %s4481_s20  ;;  %v1556_v38 = vadd.f32 %v1555_v0, %v1548_v32 }
 0x1bc   : > { %s4496_s22 = sld [smem:[#allocation106_spill]]  ;;  %v1571_v39 = vmul.f32 %v4497_v19, %v3761_v56  ;;  %v4498_v41 = vstv %s4482_s28  ;;  %v1039_v15 = vadd.f32 %v1038_v30, %v1031_v44  ;;  %v1303_v40 = vadd.f32 %v1302_v9, %v1295_v45 }
 0x1bd   : > { %s4499_s26 = sld [smem:[#allocation101_spill]]  ;;  %v1579_v26 = vmul.f32 %v4498_v41, %v3764_v57  ;;  %v4501_v35 = vstv %s4485_s12  ;;  %v1809_v6 = vadd.f32 %v1808_v28, %v1802_v23  ;;  %v1564_v63 = vadd.f32 %v1563_v60, %v1556_v38 }
 0x1be   : > { %s4500_s7 = sld [smem:[#allocation102_spill]]  ;;  %v1587_v5 = vmul.f32 %v4501_v35, %v3766_v58  ;;  %v4502_v42 = vstv %s4487_s1  ;;  %v1047_v30 = vadd.f32 %v1046_v47, %v1039_v15  ;;  %v1311_v32 = vadd.f32 %v1310_v14, %v1303_v40 }
 0x1bf   : > { %v1816_v7 = vmul.f32 %v4502_v42, %v3754_v36  ;;  %s4503_s8 = sld [smem:[#allocation107_spill]]  ;;  %v4504_v52 = vstv %s4490_s27  ;;  %v1572_v19 = vadd.f32 %v1571_v39, %v1564_v63 }
 0x1c0   : > { %v1824_v8 = vmul.f32 %v4504_v52, %v3757_v37  ;;  %v4505_v53 = vstv %s4491_s13  ;;  %s4506_s0 = sld [smem:[#allocation103_spill]]  ;;  %v1319_v38 = vadd.f32 %v1318_v25, %v1311_v32  ;;  %v4531_v32 = vstv %s3596_s10 }
 0x1c1   : > { %v1536_v10 = vmul.f32 %v4505_v53, %v3750_v54  ;;  %s4507_s2 = sld [smem:[#allocation108_spill]]  ;;  %v1817_v43 = vadd.f32 %v1816_v7, %v1809_v6  ;;  %v4509_v61 = vstv %s4495_s16  ;;  %v4520_v7 = vstv %s4398_s15 }
 0x1c2   : > { %s4508_s5 = sld [smem:[#allocation83_spill]]  ;;  %v1832_v27 = vmul.f32 %v4509_v61, %v3759_v20  ;;  %v4510_v29 = vstv %s4496_s22  ;;  %v995_v45 = vmul.f32 %v4520_v7, %v3750_v54  ;;  %v1580_v52 = vadd.f32 %v1579_v26, %v1572_v19 }
 0x1c3   : > { %v1543_v59 = vmul.f32 %v4510_v29, %v3752_v55  ;;  %v4511_v0 = vstv %s4499_s26  ;;  %s4513_s14 = sld [smem:[#allocation109_spill]]  ;;  %v1825_v23 = vadd.f32 %v1824_v8, %v1817_v43  ;;  %v4523_v8 = vstv %s4399_s25 }
 0x1c4   : > { %v1840_v1 = vmul.f32 %v4511_v0, %v3761_v56  ;;  %v4512_v18 = vstv %s4500_s7  ;;  %s4515_s6 = sld [smem:[#allocation110_spill]]  ;;  %v1002_v53 = vmul.f32 %v4523_v8, %v3752_v55  ;;  %v1588_v25 = vadd.f32 %v1587_v5, %v1580_v52 }
 0x1c5   : > { %v1848_v21 = vmul.f32 %v4512_v18, %v3764_v57  ;;  %v1544_v4 = vadd.f32 %v1543_v59, %v1536_v10  ;;  %v4514_v28 = vstv %s4503_s8  ;;  %s4516_s20 = sld [smem:[#allocation86_spill]]  ;;  %v1833_v42 = vadd.f32 %v1832_v27, %v1825_v23 }
 0x1c6   : > { %v1551_v46 = vmul.f32 %v4514_v28, %v3754_v36  ;;  %v4517_v9 = vstv %s4506_s0  ;;  %s4521_s28 = sld [smem:[#allocation111_spill]]  ;;  %v1003_v40 = vadd.f32 %v1002_v53, %v995_v45  ;;  %v4527_v26 = vstv %s3590_s21 }
 0x1c7   : > { %v1856_v60 = vmul.f32 %v4517_v9, %v3766_v58  ;;  %v4518_v41 = vstv %s4507_s2  ;;  %s4524_s12 = sld [smem:[#allocation95_spill]]  ;;  %v1841_v15 = vadd.f32 %v1840_v1, %v1833_v42  ;;  %v1010_v63 = vmul.f32 %v4527_v26, %v3754_v36 }
 0x1c8   : > { %v1559_v44 = vmul.f32 %v4518_v41, %v3757_v37  ;;  %v4519_v35 = vstv %s4508_s5  ;;  %v1552_v47 = vadd.f32 %v1551_v46, %v1544_v4  ;;  %s3899_s15 = sld [smem:[#allocation10 + $0x83]]  ;;  %v1018_v19 = vmul.f32 %v4531_v32, %v3757_v37 }
 0x1c9   : > { %v1054_v6 = vadd.f32 %v4519_v35, %v1047_v30  ;;  %v4522_v14 = vstv %s4513_s14  ;;  %v1849_v18 = vadd.f32 %v1848_v21, %v1841_v15  ;;  %s4528_s25 = sld [smem:[#allocation104_spill]]  ;;  %v1011_v5 = vadd.f32 %v1010_v63, %v1003_v40 }
 0x1ca   : > { %v1567_v39 = vmul.f32 %v4522_v14, %v3759_v20  ;;  %v1560_v43 = vadd.f32 %v1559_v44, %v1552_v47  ;;  %v4525_v61 = vstv %s4515_s6  ;;  %v4532_v21 = vstv %s3602_s30  ;;  %s3915_s21 = sld [smem:[#allocation10 + $0x186]] }
 0x1cb   : > { %v1055_v10 = vsub.f32 0.0, %v1054_v6  ;;  %v1575_v27 = vmul.f32 %v4525_v61, %v3761_v56  ;;  %v4526_v29 = vstv %s4516_s20  ;;  %v1857_v9 = vadd.f32 %v1856_v60, %v1849_v18  ;;  %s3925_s30 = sld [smem:[#allocation10 + $0x84]] }
 0x1cc   : > { %v1326_v59 = vadd.f32 %v4526_v29, %v1319_v38  ;;  %v1568_v30 = vadd.f32 %v1567_v39, %v1560_v43  ;;  %v4529_v1 = vstv %s4521_s28  ;;  %v1026_v44 = vmul.f32 %v4532_v21, %v3759_v20  ;;  %s3930_s10 = sld [smem:[#allocation10 + $0x187]] }
 0x1cd   : > { %v1056_v0 = vmul.f32 1.442695, %v1055_v10  ;;  %v1583_v23 = vmul.f32 %v4529_v1, %v3764_v57  ;;  %v4530_v28 = vstv %s4524_s12  ;;  %v1019_v42 = vadd.f32 %v1018_v19, %v1011_v5  ;;  %s4538_s1 = sld [smem:[#allocation114_spill]] }
 0x1ce   : > { %v1327_v4 = vsub.f32 0.0, %v1326_v59  ;;  %v1595_v46 = vadd.f32 %v4530_v28, %v1588_v25  ;;  %v1576_v41 = vadd.f32 %v1575_v27, %v1568_v30  ;;  %v4533_v47 = vstv %s3632_s24  ;;  %s3962_s27 = sld [smem:[#allocation10 + $0x87]] }
 0x1cf   : > { %2595 = vpow2.f32 %v1056_v0  ;;  %v1805_v7 = vmul.f32 %v4533_v47, %v3750_v54  ;;  %v4534_v45 = vstv %s4528_s25  ;;  %v4535_v14 = vstv %s4397_s19  ;;  %s3978_s23 = sld [smem:[#allocation11 + $0x1]] }
 0x1d0   : > { %v1328_v35 = vmul.f32 1.442695, %v1327_v4  ;;  %v1596_v6 = vsub.f32 0.0, %v1595_v46  ;;  %v1864_v38 = vadd.f32 %v4534_v45, %v1857_v9  ;;  %v1584_v52 = vadd.f32 %v1583_v23, %v1576_v41  ;;  %s4547_s4 = sld [smem:[#allocation20_spill]] }
 0x1d1   : > { %v1591_v60 = vmul.f32 %v4535_v14, %v3766_v58  ;;  %v1812_v39 = vmul.f32 %v1811_v2, %v3752_v55  ;;  %v1027_v53 = vadd.f32 %v1026_v44, %v1019_v42  ;;  %v4537_v10 = vstv %s3608_s17  ;;  %s4548_s13 = sld [smem:[#allocation28_spill]] }
 0x1d2   : > { %2597 = vpow2.f32 %v1328_v35  ;;  %v1597_v8 = vmul.f32 1.442695, %v1596_v6  ;;  %v1034_v15 = vmul.f32 %v4537_v10, %v3761_v56  ;;  %v1865_v43 = vsub.f32 0.0, %v1864_v38  ;;  %s4552_s7 = sld [smem:[#allocation23_spill]] }
 0x1d3   : > { %v1592_v61 = vadd.f32 %v1591_v60, %v1584_v52  ;;  %v1813_v27 = vadd.f32 %v1812_v39, %v1805_v7  ;;  %v1820_v2 = vmul.f32 %v1819_v3, %v3754_v36  ;;  %v4539_v59 = vstv %s3614_s3  ;;  %s3951_s3 = sld [smem:[#allocation11 + $0x3]] }
 0x1d4   : > { %2599 = vpow2.f32 %v1597_v8  ;;  %v1035_v29 = vadd.f32 %v1034_v15, %v1027_v53  ;;  %v1042_v25 = vmul.f32 %v4539_v59, %v3764_v57  ;;  %v1289_v40 = vstv %s3899_s15  ;;  %s4553_s8 = sld [smem:[#allocation26_spill]]  ;;  %s2805_s15 = smov [#allocation13]  }
 0x1d5   : > { %v1866_v26 = vmul.f32 1.442695, %v1865_v43  ;;  %v4541_v63 = vstv %s3570_s11  ;;  %v1821_v18 = vadd.f32 %v1820_v2, %v1813_v27  ;;  %v1828_v30 = vmul.f32 %v1827_v16, %v3757_v37  ;;  %s4544_s11 = sld [smem:[#allocation115_spill]]  ;;  %s2722_s25 = sshll.u32 %s2805_s15, 4  ;;  %s2723_s25 = int_to_ptr.vmem [resolvable:$false] %s2722_s25 }
 0x1d6   : > { %v1603_v0 = vadd.f32 %v4541_v63, %v1592_v61  ;;  %v1043_v3 = vadd.f32 %v1042_v25, %v1035_v29  ;;  %v4542_v1 = vstv %s4538_s1  ;;  %v1267_v4 = vmul.f32 %v1266_v31, %v3750_v54  ;;  %s427_s16 = sand.u32 1, %s4547_s4   ;;  %s4554_s6 = sld [smem:[#allocation126_spill]] }
 0x1d7   : > { %v1050_v23 = vmul.f32 %v4542_v1, %v3766_v58  ;;  %v1274_v28 = vmul.f32 %v1273_v33, %v3752_v55  ;;  %2601 = vpow2.f32 %v1866_v26  ;;  %v1829_v46 = vadd.f32 %v1828_v30, %v1821_v18  ;;  %s2219_s22 = sshll.u32 %s427_s16, 3  ;;  %s2070_s28 = scalar_lea.sflag [#allocation3], %s427_s16 }
 0x1d8   : > { %v1604_v16 = vsub.f32 0.0, %v1603_v0  ;;  %v1836_v5 = vmul.f32 %v1835_v22, %v3759_v20  ;;  %v1851_v19 = vstv %s3915_s21  ;;  %v1282_v41 = vmul.f32 %v1281_v34, %v3754_v36  ;;  %s4035_s26 = scalar_lea.vmem [#allocation13], %s2219_s22  ;;  %s2351_s0 = sshll.u32 %s4552_s7, 7 }
 0x1d9   : > { %v1051_v32 = vadd.f32 %v1050_v23, %v1043_v3  ;;  %v1275_v9 = vadd.f32 %v1274_v28, %v1267_v4  ;;  %v1844_v55 = vmul.f32 %v1843_v62, %v3761_v56  ;;  %v1297_v33 = vstv %s3925_s30  ;;  %s2084_s2 = sshll.u32 %s4035_s26, 4  ;;  %s2724_s21 = scalar_lea.vmem %s2723_s25, 256  ;;  %s2085_s2 = int_to_ptr.vmem [resolvable:$true] %s2084_s2 }
 0x1da   : > { %v1605_v54 = vmul.f32 1.442695, %v1604_v16  ;;  %v1837_v31 = vadd.f32 %v1836_v5, %v1829_v46  ;;  %v1859_v35 = vstv %s3930_s10  ;;  %v1290_v6 = vmul.f32 %v1289_v40, %v3757_v37  ;;  %s2718_s12 = scalar_lea.vmem %s2085_s2, 128  ;;  %p4555_p3 = scmp.ne.s32.totalorder %s4553_s8, 0 }
 0x1db   : > { %v4545_v21 = vstv %s4544_s11  ;;  %v1283_v22 = vadd.f32 %v1282_v41, %v1275_v9  ;;  %v1852_v47 = vmul.f32 %v1851_v19, %v3764_v57  ;;  %v1305_v7 = vstv %s3935_s9  ;;  %p2719_p2 = scmp.ne.s32.totalorder %s2085_s2, %s2718_s12  ;;  %p2725_p7 = scmp.lt.s32.totalorder %s2085_s2, %s2723_s25 }
 0x1dc   : > { %v1062_v44 = vadd.f32 %v4545_v21, %v1051_v32  ;;  %2603 = vpow2.f32 %v1605_v54  ;;  %v1845_v42 = vadd.f32 %v1844_v55, %v1837_v31  ;;  %v2596_v36 = vpop.eup %2595  ;;  %v1298_v45 = vmul.f32 %v1297_v33, %v3759_v20  ;;  %s2082_s20 = scalar_lea.hbm %s4554_s6, %s2351_s0  ;;  %p2726_p8 = scmp.lt.s32.totalorder %s2724_s21, %s2718_s12 }
 0x1dd   : > { %v1291_v62 = vadd.f32 %v1290_v6, %v1283_v22  ;;  %v1058_v38 = vadd.f32 1.0, %v2596_v36  ;;  %v1860_v14 = vmul.f32 %v1859_v35, %v3766_v58  ;;  %v1313_v60 = vstv %s3946_s18  ;;  %p2720_p4 = pnand %p2719_p2, %p4555_p3 }
 0x1de   : > { %v1063_v34 = vsub.f32 0.0, %v1062_v44  ;;  %v1853_v52 = vadd.f32 %v1852_v47, %v1845_v42  ;;  %v1871_v37 = vstv %s3951_s3  ;;  %v1306_v53 = vmul.f32 %v1305_v7, %v3761_v56  ;;  %p2727_p5 = por %p2726_p8, %p2725_p7 }
 0x1df   : > { %v1299_v8 = vadd.f32 %v1298_v45, %v1291_v62  ;;  %v2598_v10 = vpop.eup %2597  ;;  %2605 = vrcp.f32 %v1058_v38  ;;  %v1321_v43 = vstv %s3962_s27  ;;  %v1314_v20 = vmul.f32 %v1313_v60, %v3764_v57  ;;  %v2627_v60 = vld [vmem:[%s4548_s13] ss:$4 sm:$0x3]  ;;  %p2721_p9 = pneg %p2720_p4 }
 0x1e0   : > { %v1064_v39 = vmul.f32 1.442695, %v1063_v34  ;;  %v1861_v15 = vadd.f32 %v1860_v14, %v1853_v52  ;;  %v1330_v61 = vadd.f32 1.0, %v2598_v10  ;;  %v1322_v25 = vmul.f32 %v1321_v43, %v3766_v58 }
 0x1e1   : > { %v1307_v27 = vadd.f32 %v1306_v53, %v1299_v8  ;;  %v2600_v2 = vpop.eup %2599  ;;  %v1333_v63 = vstv %s3978_s23  ;;  %v4546_v46 = vmov 0.0   ;;  %v2804_v22 = vmov 1966171168   ;;  %p2728_p0 = pnand %p2727_p5, %p2721_p9 }
 0x1e2   : > { %2607 = vpow2.f32 %v1064_v39  ;;  %v1872_v29 = vadd.f32 %v1871_v37, %v1861_v15  ;;  %v1599_v40 = vadd.f32 1.0, %v2600_v2  ;;  %v1149_v6 = vunpack.c.l.s4 %v2804_v22 }
 0x1e3   : > { %v1315_v59 = vadd.f32 %v1314_v20, %v1307_v27  ;;  %2609 = vrcp.f32 %v1330_v61  ;;  %v4549_v8 = vlaneseq }
 0x1e4   : > { %v1873_v26 = vsub.f32 0.0, %v1872_v29  ;;  %v2602_v56 = vpop.eup %2601  ;;  %2611 = vrcp.f32 %v1599_v40  ;;  %v2298_v40 = vld [vmem:[%s4548_s13 + $0x1] ss:$4 sm:$0x3] }
 0x1e5   : > { %v1323_v0 = vadd.f32 %v1322_v25, %v1315_v59  ;;  %v1868_v30 = vadd.f32 1.0, %v2602_v56  ;;  %vm4031_vm1 = vcmp.lt.s32.totalorder %v4549_v8, 256 }
 0x1e6   : > { %v1874_v18 = vmul.f32 1.442695, %v1873_v26 }
 0x1e7   : > { %v1334_v3 = vadd.f32 %v1333_v63, %v1323_v0 }
 0x1e8   : > { %2613 = vpow2.f32 %v1874_v18 }
 0x1e9   : > { %v2604_v1 = vpop.eup %2603  ;;  %v1335_v23 = vsub.f32 0.0, %v1334_v3  ;;  %2615 = vrcp.f32 %v1868_v30 }
 0x1ea   : > { %v1607_v4 = vadd.f32 1.0, %v2604_v1 }
 0x1eb   : > { %v1336_v57 = vmul.f32 1.442695, %v1335_v23 }
 0x1ec   : > { %2617 = vrcp.f32 %v1607_v4  ;;  %v2606_v28 = vpop.eup %2605  ;;  %v2320_v4 = vld [vmem:[%s4548_s13 + $0x2] ss:$4 sm:$0x3] }
 0x1ed   : > { %2619 = vpow2.f32 %v1336_v57  ;;  %2278 = vmatmul.mubr.msk.f32.vlgmr.msra.gmra.mxu1 %vm1071_vm0, %v2606_v28 }
 0x1ee   : > { %1468 = vmatpush1.msra.mxu1 %v3415_v49  ;;  %1503 = vmatprep.mubr.f32.mxu1 %v4546_v46 }
 0x1ef   : > { %v2608_v58 = vpop.eup %2607  ;;  %1469 = vmatprep.subr.mxu1 %v3420_v50 }
 0x1f0   : > { %v1066_v16 = vadd.f32 1.0, %v2608_v58  ;;  %v2610_v5 = vpop.eup %2609  ;;  %1470 = vmatpush1.msra.mxu1 %v3428_v51 }
 0x1f1   : > { %2299 = vmatmul.mubr.msk.f32.vlgmr.msra.gmra.mxu1 %vm1071_vm0, %v2610_v5  ;;  %1736 = vmatprep.subr.mxu1 %v3410_v48  ;;  %v2612_v32 = vpop.eup %2611 }
 0x1f2   : > { %2621 = vrcp.f32 %v1066_v16  ;;  %1737 = vmatpush1.msra.mxu1 %v3415_v49  ;;  %1772 = vmatprep.mubr.f32.mxu1 %v4546_v46 }
 0x1f3   : > { %1738 = vmatprep.subr.mxu1 %v3420_v50 }
 0x1f4   : > { %1739 = vmatpush1.msra.mxu1 %v3428_v51 }
 0x1f5   : > { %v2614_v19 = vpop.eup %2613  ;;  %2321 = vmatmul.mubr.msk.f32.vlgmr.msra.gmra.mxu1 %vm1071_vm0, %v2612_v32  ;;  %2005 = vmatprep.subr.mxu1 %v3410_v48 }
 0x1f6   : > { %v1876_v9 = vadd.f32 1.0, %v2614_v19  ;;  %2006 = vmatpush1.msra.mxu1 %v3415_v49  ;;  %2041 = vmatprep.mubr.f32.mxu1 %v4546_v46  ;;  %v2616_v41 = vpop.eup %2615 }
 0x1f7   : > { %2007 = vmatprep.subr.mxu1 %v3420_v50 }
 0x1f8   : > { %2623 = vrcp.f32 %v1876_v9  ;;  %2008 = vmatpush1.msra.mxu1 %v3428_v51  ;;  %v2342_v9 = vld [vmem:[%s4548_s13 + $0x3] ss:$4 sm:$0x3] }
 0x1f9   : > { %v2618_v54 = vpop.eup %2617  ;;  %2343 = vmatmul.mubr.msk.f32.vlgmr.msra.gmra.mxu1 %vm1071_vm0, %v2616_v41 }
 0x1fa   : > { %v2620_v31 = vpop.eup %2619  ;;  %1610 = vrot.lane.b32.xlu1 %v2618_v54, %s2803_s29 }
 0x1fb   : > { %v1338_v55 = vadd.f32 1.0, %v2620_v31 }
 0x1fd   : > { %2625 = vrcp.f32 %v1338_v55 }
 0x1ff   : > { %v2622_v48 = vpop.eup %2621 }
 0x200   : > { %1069 = vrot.lane.b32.xlu0 %v2622_v48, %s2803_s29 }
 0x205   : > { %v2624_v33 = vpop.eup %2623 }
 0x206   : > { %1879 = vrot.lane.b32.xlu1 %v2624_v33, %s2803_s29 }
 0x20a   : > { %v2626_v49 = vpop.eup %2625 }
 0x20b   : > { %1341 = vrot.lane.b32.xlu0 %v2626_v49, %s2803_s29 }
 0x26c   : > { %v1611_v51 = vpop.permute.xlu1 %1610 }
 0x272   : > { %v1070_v21 = vpop.permute.xlu0 %1069 }
 0x273   : > { %2277 = vmatmul.mubr.msk.f32.vlgmr.msra.gmra.mxu0 %vm1071_vm0, %v1070_v21 }
 0x274   : > { %1374 = vmatpush1.msra.mxu0 %v3534_v12  ;;  %1409 = vmatprep.mubr.f32.mxu0 %v4546_v46 }
 0x275   : > { %1375 = vmatprep.subr.mxu0 %v3539_v13 }
 0x276   : > { %1376 = vmatpush1.msra.mxu0 %v3550_v17 }
 0x277   : > { %1642 = vmatprep.subr.mxu0 %v3529_v11 }
 0x278   : > { %v1880_v44 = vpop.permute.xlu1 %1879 }
 0x27d   : > { %v1342_v50 = vpop.permute.xlu0 %1341 }
 0x27e   : > { %2297 = vmatmul.mubr.msk.f32.vlgmr.msra.gmra.mxu0 %vm1071_vm0, %v1342_v50 }
 0x27f   : > { %1643 = vmatpush1.msra.mxu0 %v3534_v12  ;;  %1678 = vmatprep.mubr.f32.mxu0 %v4546_v46 }
 0x280   : > { %1644 = vmatprep.subr.mxu0 %v3539_v13 }
 0x281   : > { %1645 = vmatpush1.msra.mxu0 %v3550_v17 }
 0x282   : > { %1911 = vmatprep.subr.mxu0 %v3529_v11  ;;  %2319 = vmatmul.mubr.msk.f32.vlgmr.msra.gmra.mxu0 %vm1071_vm0, %v1611_v51  ;;  %v1150_v11 = vunpack.c.0.s8 %v1149_v6 }
 0x283   : > { %1912 = vmatpush1.msra.mxu0 %v3534_v12  ;;  %1947 = vmatprep.mubr.f32.mxu0 %v4546_v46 }
 0x284   : > { %1913 = vmatprep.subr.mxu0 %v3539_v13  ;;  %v1153_v12 = vsub.s32 %v1150_v11, %v3157_v24 }
 0x285   : > { %1914 = vmatpush1.msra.mxu0 %v3550_v17 }
 0x286   : > { %2341 = vmatmul.mubr.msk.f32.vlgmr.msra.gmra.mxu0 %vm1071_vm0, %v1880_v44 }
 0x2ad   : > { %v1233_v35 = vpop.f32.mrf.mxu1 }
 0x2af   : > { %v1235_v42 = vpop.f32.mrf.mxu1 }
 0x2b0   : > { %v1240_v36 = vcombine.low %v1233_v35, %v1235_v42 }
 0x2b1   : > { %v1505_v47 = vpop.f32.mrf.mxu1 }
 0x2b2   : > { %v1247_v45 = vrot.slane %v1240_v36, %v1153_v12 }
 0x2b3   : > { %v1507_v34 = vpop.f32.mrf.mxu1 }
 0x2b4   : > { %v1254_v14 = vrot.slane %v1247_v45, %v1153_v12  ;;  %v1512_v10 = vcombine.low %v1505_v47, %v1507_v34 }
 0x2b5   : > { %v1774_v38 = vpop.f32.mrf.mxu1 }
 0x2b6   : > { %v1519_v20 = vrot.slane %v1512_v10, %v1153_v12 }
 0x2b7   : > { %v1776_v37 = vpop.f32.mrf.mxu1 }
 0x2b8   : > { %v1781_v29 = vcombine.low %v1774_v38, %v1776_v37  ;;  %v1526_v0 = vrot.slane %v1519_v20, %v1153_v12 }
 0x2b9   : > { %v2043_v43 = vpop.f32.mrf.mxu1 }
 0x2ba   : > { %v1788_v30 = vrot.slane %v1781_v29, %v1153_v12 }
 0x2bb   : > { %v2045_v25 = vpop.f32.mrf.mxu1 }
 0x2bc   : > { %v2050_v3 = vcombine.low %v2043_v43, %v2045_v25  ;;  %v1795_v46 = vrot.slane %v1788_v30, %v1153_v12 }
 0x2be   : > { %v2057_v5 = vrot.slane %v2050_v3, %v1153_v12 }
 0x2c0   : > { %v2064_v31 = vrot.slane %v2057_v5, %v1153_v12 }
 0x333   : > { %v1140_v7 = vpop.f32.mrf.mxu0 }
 0x335   : > { %v1142_v13 = vpop.f32.mrf.mxu0 }
 0x336   : > { %v1147_v62 = vcombine.low %v1140_v7, %v1142_v13 }
 0x338   : > { %v1154_v17 = vrot.slane %v1147_v62, %v1153_v12 }
 0x33a   : > { %v1161_v52 = vrot.slane %v1154_v17, %v1153_v12 }
 0x33c   : > { %v1163_v39 = vmul.f32 %v2627_v60, %v1161_v52 }
 0x33e   : > { %v1256_v24 = vmul.f32 %v1254_v14, %v1163_v39  ;;  %v1411_v15 = vpop.f32.mrf.mxu0 }
 0x340   : > { %1261 = vst.msk [vmem:[%s4035_s26] ss:$4 sm:$0x3] %vm4031_vm1, %v1256_v24  ;;  %v1413_v61 = vpop.f32.mrf.mxu0 }
 0x341   : > { %v1419_v27 = vcombine.low %v1411_v15, %v1413_v61 }
 0x342   : > { %v1680_v2 = vpop.f32.mrf.mxu0 }
 0x343   : > { %v1426_v59 = vrot.slane %v1419_v27, %v1153_v12 }
 0x344   : > { %v1682_v26 = vpop.f32.mrf.mxu0 }
 0x345   : > { %v1433_v63 = vrot.slane %v1426_v59, %v1153_v12  ;;  %v1688_v56 = vcombine.low %v1680_v2, %v1682_v26 }
 0x346   : > { %v1949_v18 = vpop.f32.mrf.mxu0 }
 0x347   : > { %v1435_v1 = vmul.f32 %v2298_v40, %v1433_v63  ;;  %v1695_v23 = vrot.slane %v1688_v56, %v1153_v12 }
 0x348   : > { %v1951_v57 = vpop.f32.mrf.mxu0 }
 0x349   : > { %v1528_v28 = vmul.f32 %v1526_v0, %v1435_v1  ;;  %v1702_v58 = vrot.slane %v1695_v23, %v1153_v12  ;;  %v1957_v16 = vcombine.low %v1949_v18, %v1951_v57 }
 0x34b   : > { %v1704_v32 = vmul.f32 %v2320_v4, %v1702_v58  ;;  %v1964_v19 = vrot.slane %v1957_v16, %v1153_v12  ;;  %2300 = vst.msk [vmem:[%s4035_s26 + $0x1] ss:$4 sm:$0x3] %vm4031_vm1, %v1528_v28 }
 0x34d   : > { %v1797_v41 = vmul.f32 %v1795_v46, %v1704_v32  ;;  %v1971_v54 = vrot.slane %v1964_v19, %v1153_v12 }
 0x34f   : > { %v1973_v55 = vmul.f32 %v2342_v9, %v1971_v54  ;;  %2322 = vst.msk [vmem:[%s4035_s26 + $0x2] ss:$4 sm:$0x3] %vm4031_vm1, %v1797_v41 }
 0x351   : > { %v2066_v48 = vmul.f32 %v2064_v31, %v1973_v55 }
 0x353   : > { %2344 = vst.msk [vmem:[%s4035_s26 + $0x3] ss:$4 sm:$0x3] %vm4031_vm1, %v2066_v48 }
 0x354   : > { %2731 = shalt.err (!%p2728_p0)
}
 0x355   : > { %s2732_s30 = scalar_lea.hbm %s2082_s20, 128  ;;  %s2736_s1 = scalar_lea.hbm %s4554_s6, 256 }
 0x356   : > { %p2733_p6 = scmp.ne.s32.totalorder %s2082_s20, %s2732_s30  ;;  %p2737_p11 = scmp.lt.s32.totalorder %s2082_s20, %s4554_s6 }
 0x357   : > { %p2738_p13 = scmp.lt.s32.totalorder %s2736_s1, %s2732_s30 }
 0x358   : > { %p2734_p10 = pnand %p2733_p6, %p4555_p3 }
 0x359   : > { %p2739_p1 = por %p2738_p13, %p2737_p11 }
 0x35a   : > { %p2735_p12 = pneg %p2734_p10 }
 0x35c   : > { %p2740_p2 = pnand %p2739_p1, %p2735_p12 }
 0x35e   : > { %2743 = shalt.err (!%p2740_p2)
}
 0x35f   : > { %2516 = dma.vmem_to_hbm [thread:$0]  (%p4555_p3), %s2085_s2, 128, %s2082_s20, %s2070_s28  }
 0x360 PF: > { %s4556_s18 = sld [smem:[#allocation22_spill]] }
 0x361   : > { %s4557_s17 = sld [smem:[#allocation19_spill]] }
 0x362   : > { %s4558_s3 = sld [smem:[#allocation27_spill]] }
 0x366   : > { %p2553_p4 = scmp.ge.s32.totalorder %s4556_s18, 2 }
 0x367   : > { %s2096_s11 = sand.u32 1, %s4557_s17  }
 0x368   : > { %p4559_p9 = scmp.ne.s32.totalorder %s4558_s3, 0  ;;  %s2097_s27 = scalar_lea.sflag [#allocation3], %s2096_s11 }
 0x36a   : > { %p2538_p7 = pnand %p2553_p4, %p4559_p9 }
 0x36c   : > { %p2539_p8 = pneg %p2538_p7 }
 0x36e   : > { %2777 = dma.done.wait (%p2539_p8), %s2097_s27, 128  }
 0x36f   : > { %2779 = vsyncadd (%p2539_p8), %s2097_s27, 4294967168  ;;  %s4560_s16 = sld [smem:[#allocation24_spill]] }
 0x370   : > { %s4561_s13 = sld [smem:[#allocation20_spill]] }
 0x371   : > { %s4562_s14 = sld [smem:[#allocation21_spill]] }
 0x372   : > { %s4563_s15 = sld [smem:[#allocation25_spill]] }
 0x375   : > { %p24_p5 = scmp.ge.s32.totalorder %s4560_s16, 4  }
 0x377   :  { %26 = sbr.rel (!%p24_p5) target bundleno = 19 (0x13), region = 126 }
 0x37c   :  { %2102 = vsyncpa [#allocation3], 1 }
 0x37d   :  { %2104 = vsyncpa [#allocation3 + $0x1], 1 }
 0x37e   :  { %2105 = vsyncpa [#allocation4], 1 }
 0x37f   :  { %2107 = vsyncpa [#allocation4 + $0x1], 1 }
 0x380   :  { %2108 = vsyncpa [#allocation6], 1 }
 0x381   :  { %2109 = vsyncpa [#allocation9], 1 }
 0x382   :  { %2110 = vsyncpa [#allocation12], 1 }

</bundles_post_ra>
